<compile_context>
chip_gen: v5e
topology: v5e:2x2
jax: 0.10.0
libtpu: 0.0.40
codegen_flags: <defaults>
</compile_context>

<pallas_src>
import functools

import jax
import jax.numpy as jnp
from jax.experimental import pallas as pl
from jax.experimental.pallas import tpu as pltpu


def trading_lstm_kernel(x_ref, wih_ref, whh_ref, wh_ref, bh_ref,
                        ind_ref, gum_ref, sel_ref, beta_ref, bias_ref,
                        out_ref, xg_ref, *, tau, seq_len):
    """All array refs live whole in VMEM; only the output bias is in SMEM.

    x_ref    : (T*B, D+1)           time-major rows, ones column appended
    wih_ref  : (D+1, 4H)            LSTM input->hidden weights, bias row folded in
    whh_ref  : (H, 4H)              LSTM hidden->hidden weights
    wh_ref   : (H, NI*M + 2*NI)     packed [window | theta_plus | theta_minus] heads
    bh_ref   : (1, NI*M + 2*NI)     packed head biases
    ind_ref  : (B, NI*M)            flattened indicator bank (i-major)
    gum_ref  : (B, NI*M)            flattened pre-sampled Gumbel noise
    sel_ref  : (NI*M, NI)           0/1 segment-sum selector matrix
    beta_ref : (NI, 1)              mixing weights (VMEM column)
    bias_ref : (1,)     [SMEM]      final scalar bias
    out_ref  : (B, 1)               tanh decision
    xg_ref   : (T*B, 4H) scratch    precomputed input-gate slab
    """
    T = seq_len
    TB = x_ref.shape[0]
    B = TB // T
    H = whh_ref.shape[0]
    NM, NI = sel_ref.shape          # NI*M, NI
    inv_tau = 1.0 / tau

    # --- Hoisted input projection (bias folded in): one MXU call for all T. ---
    xg_ref[...] = jnp.dot(x_ref[...], wih_ref[...],
                          preferred_element_type=jnp.float32)    # (T*B, 4H)

    whh = whh_ref[...]                                           # (H, 4H)

    # --- Recurrence: fully unrolled, static addressing, gate order i,f,g,o. ---
    h = jnp.zeros((B, H), jnp.float32)
    c = jnp.zeros((B, H), jnp.float32)
    for t in range(T):                                           # static unroll
        gates = (xg_ref[t * B:(t + 1) * B, :]
                 + jnp.dot(h, whh, preferred_element_type=jnp.float32))  # (B, 4H)
        # Whole-vreg transcendentals (2 EUP passes), lane-slice afterwards.
        sig = jax.nn.sigmoid(gates)
        tnh = jnp.tanh(gates)
        c = sig[:, H:2 * H] * c + sig[:, :H] * tnh[:, 2 * H:3 * H]
        h = sig[:, 3 * H:] * jnp.tanh(c)

    # --- Fused heads: ONE matmul for window logits + both thresholds. ---
    head = (jnp.dot(h, wh_ref[...], preferred_element_type=jnp.float32)
            + bh_ref[...])                                       # (B, NI*M + 2*NI)
    win = head[:, :NM]                                           # (B, NI*M)
    thp = head[:, NM:NM + NI]                                    # (B, NI)
    thm = head[:, NM + NI:NM + 2 * NI]                           # (B, NI)

    # --- Vectorized Gumbel-softmax over all NI indicators at once. ---
    z = (win + gum_ref[...]) * inv_tau                           # (B, NI*M)
    # Row-wise max is constant within every segment -> per-segment softmax
    # is unchanged, and exp stays in range.
    z = z - jnp.max(z, axis=-1, keepdims=True)
    e = jnp.exp(z)                                               # one EUP pass
    denom = jnp.dot(e, sel_ref[...],
                    preferred_element_type=jnp.float32)          # (B, NI)
    num = jnp.dot(e * ind_ref[...], sel_ref[...],
                  preferred_element_type=jnp.float32)            # (B, NI)
    iv = num / denom                                             # exact divide

    s = (jax.nn.sigmoid((iv - thp) * 10.0)
         - jax.nn.sigmoid((thm - iv) * 10.0))                    # (B, NI)

    dec = (jnp.dot(s, beta_ref[...], preferred_element_type=jnp.float32)
           + bias_ref[0])                                        # (B, 1)
    out_ref[...] = jnp.tanh(dec)                                 # one coarse store


def lstm_trading_agent(x, indicator_bank, params, gumbel, *, tau=1.0):
    """x: (B, T, D) float32; indicator_bank: list of NI arrays (B, M)."""
    B, T, D = x.shape
    H = params["whh"].shape[0]
    NI, _, M = params["ww"].shape

    # Pad batch to the f32 sublane count (8); padded rows are independent junk
    # (no cross-batch reductions anywhere in the kernel).
    B_pad = ((B + 7) // 8) * 8
    pad = B_pad - B

    x_p = jnp.pad(x, ((0, pad), (0, 0), (0, 0)))
    x_flat = jnp.transpose(x_p, (1, 0, 2)).reshape(T * B_pad, D)  # time-major rows
    x_flat = jnp.concatenate(
        [x_flat, jnp.ones((T * B_pad, 1), jnp.float32)], axis=1)  # ones col for bias

    wih_ext = jnp.concatenate([params["wih"], params["b"]], axis=0)  # (D+1, 4H)

    # Flatten indicator bank / Gumbel noise to (B_pad, NI*M), indicator-major.
    ind = jnp.stack(indicator_bank, axis=0)                        # (NI, B, M)
    ind_flat = (jnp.pad(ind, ((0, 0), (0, pad), (0, 0)))
                .transpose(1, 0, 2).reshape(B_pad, NI * M))
    gum_flat = (jnp.pad(gumbel, ((0, 0), (0, pad), (0, 0)))
                .transpose(1, 0, 2).reshape(B_pad, NI * M))

    # Packed heads: [window logits (NI*M) | theta_plus (NI) | theta_minus (NI)].
    W_win = jnp.transpose(params["ww"], (1, 0, 2)).reshape(H, NI * M)
    W_thr = jnp.transpose(params["wt"], (1, 0, 2))                 # (H, NI, 2)
    W_head = jnp.concatenate([W_win, W_thr[:, :, 0], W_thr[:, :, 1]], axis=1)
    b_head = jnp.concatenate([params["bw"].reshape(NI * M),
                              params["bt"][:, 0],
                              params["bt"][:, 1]]).reshape(1, NI * M + 2 * NI)

    # Segment-sum selector matrix: sel[i*M + j, i] = 1.
    sel = (jnp.arange(NI * M)[:, None] // M
           == jnp.arange(NI)[None, :]).astype(jnp.float32)         # (NI*M, NI)

    beta = params["beta"].reshape(NI, 1).astype(jnp.float32)
    bias = params["bias"].reshape(1).astype(jnp.float32)

    kernel = functools.partial(trading_lstm_kernel, tau=tau, seq_len=T)
    vmem = pl.BlockSpec(memory_space=pltpu.MemorySpace.VMEM)
    smem = pl.BlockSpec(memory_space=pltpu.MemorySpace.SMEM)

    out = pl.pallas_call(
        kernel,
        out_shape=jax.ShapeDtypeStruct((B_pad, 1), jnp.float32),
        in_specs=[vmem] * 9 + [smem],
        out_specs=vmem,
        scratch_shapes=[pltpu.VMEM((T * B_pad, 4 * H), jnp.float32)],
    )(x_flat, wih_ext, params["whh"], W_head, b_head,
      ind_flat, gum_flat, sel, beta, bias)
    return out[:B, 0]                                              # (B,)


def reference_forward(x, indicator_bank, params, gumbel, tau=1.0):
    """Pure-JAX reference with identical semantics (for correctness check)."""
    B, T, D = x.shape
    H = params["whh"].shape[0]
    NI = params["ww"].shape[0]
    h = jnp.zeros((B, H), jnp.float32)
    c = jnp.zeros((B, H), jnp.float32)
    for t in range(T):
        gates = x[:, t, :] @ params["wih"] + h @ params["whh"] + params["b"]
        i_g = jax.nn.sigmoid(gates[:, :H])
        f_g = jax.nn.sigmoid(gates[:, H:2 * H])
        g_g = jnp.tanh(gates[:, 2 * H:3 * H])
        o_g = jax.nn.sigmoid(gates[:, 3 * H:])
        c = f_g * c + i_g * g_g
        h = o_g * jnp.tanh(c)
    signals = []
    for i in range(NI):
        logits = h @ params["ww"][i] + params["bw"][i]
        w = jax.nn.softmax((logits + gumbel[i]) / tau, axis=-1)
        iv = jnp.sum(w * indicator_bank[i], axis=-1)
        th = h @ params["wt"][i] + params["bt"][i]
        s = (jax.nn.sigmoid((iv - th[:, 0]) / 0.1)
             - jax.nn.sigmoid((th[:, 1] - iv) / 0.1))
        signals.append(s)
    S = jnp.stack(signals, axis=-1)
    return jnp.tanh(S @ params["beta"][:, 0] + params["bias"][0, 0])


if __name__ == "__main__":
    # Shapes implied by the PyTorch script (batch of 4 samples).
    B, T = 4, 20
    D, H = 6, 32          # d_input, d_hidden
    NI, M = 4, 5          # num_indicators, len(window_sizes)
    tau = 1.0

    key = jax.random.PRNGKey(0)
    ks = jax.random.split(key, 16)
    scale = 1.0 / jnp.sqrt(jnp.float32(H))

    # Deterministic synthetic parameters (shapes from LSTMTradingAgent.__init__).
    params = {
        "wih":  jax.random.uniform(ks[0], (D, 4 * H), jnp.float32, -scale, scale),
        "whh":  jax.random.uniform(ks[1], (H, 4 * H), jnp.float32, -scale, scale),
        "b":    jax.random.uniform(ks[2], (1, 4 * H), jnp.float32, -scale, scale),
        "ww":   jax.random.normal(ks[3], (NI, H, M), jnp.float32) * 0.1,
        "bw":   jax.random.normal(ks[4], (NI, M), jnp.float32) * 0.1,
        "wt":   jax.random.normal(ks[5], (NI, H, 2), jnp.float32) * 0.1,
        "bt":   jax.random.normal(ks[6], (NI, 2), jnp.float32) * 0.1,
        "beta": jax.random.normal(ks[7], (NI, 1), jnp.float32),
        "bias": jnp.zeros((1, 1), jnp.float32),
    }

    # Inputs.
    x = jax.random.normal(ks[8], (B, T, D), jnp.float32)
    indicator_bank = [jax.random.normal(ks[9 + i], (B, M), jnp.float32)
                      for i in range(NI)]

    # Gumbel noise (sampled once in the wrapper, shared by kernel & reference).
    u = jax.random.uniform(ks[13], (NI, B, M), jnp.float32,
                           minval=1e-6, maxval=1.0 - 1e-6)
    gumbel = -jnp.log(-jnp.log(u))

    decision = lstm_trading_agent(x, indicator_bank, params, gumbel, tau=tau)
    decision = jax.block_until_ready(decision)

    ref = reference_forward(x, indicator_bank, params, gumbel, tau=tau)
    assert decision.shape == (B,), decision.shape
    assert jnp.allclose(decision, ref, atol=1e-4, rtol=1e-4), (decision, ref)

    print("KERNEL_OK")
</pallas_src>

<mosaic_0001>
module attributes {stable_mosaic.version = 11 : i64} {
  func.func @trading_lstm_kernel(%arg0: memref<160x7xf32, #tpu.memory_space<vmem>>, %arg1: memref<7x128xf32, #tpu.memory_space<vmem>>, %arg2: memref<32x128xf32, #tpu.memory_space<vmem>>, %arg3: memref<32x28xf32, #tpu.memory_space<vmem>>, %arg4: memref<1x28xf32, #tpu.memory_space<vmem>>, %arg5: memref<8x20xf32, #tpu.memory_space<vmem>>, %arg6: memref<8x20xf32, #tpu.memory_space<vmem>>, %arg7: memref<20x4xf32, #tpu.memory_space<vmem>>, %arg8: memref<4x1xf32, #tpu.memory_space<vmem>>, %arg9: memref<1xf32, #tpu.memory_space<smem>>, %arg10: memref<8x1xf32, #tpu.memory_space<vmem>>, %arg11: memref<160x128xf32, #tpu.memory_space<vmem>>) attributes {dimension_semantics = [], scalar_prefetch = 0 : i64, scratch_operands = 1 : i64, tpu.core_type = #tpu.core_type<tc>} {
    %c0 = arith.constant 0 : index
    %c0_0 = arith.constant 0 : index
    %0 = vector.load %arg0[%c0, %c0_0] : memref<160x7xf32, #tpu.memory_space<vmem>>, vector<160x7xf32>
    %c0_1 = arith.constant 0 : index
    %c0_2 = arith.constant 0 : index
    %1 = vector.load %arg1[%c0_1, %c0_2] : memref<7x128xf32, #tpu.memory_space<vmem>>, vector<7x128xf32>
    %cst = arith.constant dense<0.000000e+00> : vector<160x128xf32>
    %2 = tpu.matmul %0, %1, %cst {dimension_numbers = #tpu.dot_dimension_numbers<[1], [0], [0], [1], [0, 0, 1, 1], [], []>} : vector<160x7xf32>, vector<7x128xf32>, vector<160x128xf32> -> vector<160x128xf32>
    %c0_3 = arith.constant 0 : index
    %c0_4 = arith.constant 0 : index
    %3 = vector.load %arg11[%c0_3, %c0_4] : memref<160x128xf32, #tpu.memory_space<vmem>>, vector<160x128xf32>
    tpu.vector_store %arg11[%c0_3, %c0_4], %2 {strides = array<i32>} : memref<160x128xf32, #tpu.memory_space<vmem>>, vector<160x128xf32>,
    %c0_5 = arith.constant 0 : index
    %c0_6 = arith.constant 0 : index
    %4 = vector.load %arg2[%c0_5, %c0_6] : memref<32x128xf32, #tpu.memory_space<vmem>>, vector<32x128xf32>
    %cst_7 = arith.constant 0.000000e+00 : f32
    %5 = vector.broadcast %cst_7 : f32 to vector<8x32xf32>
    %cst_8 = arith.constant 0.000000e+00 : f32
    %6 = vector.broadcast %cst_8 : f32 to vector<8x32xf32>
    %c0_9 = arith.constant 0 : index
    %c0_10 = arith.constant 0 : index
    %7 = vector.load %arg11[%c0_9, %c0_10] : memref<160x128xf32, #tpu.memory_space<vmem>>, vector<8x128xf32>
    %cst_11 = arith.constant dense<0.000000e+00> : vector<8x128xf32>
    %8 = tpu.matmul %5, %4, %cst_11 {dimension_numbers = #tpu.dot_dimension_numbers<[1], [0], [0], [1], [0, 0, 1, 1], [], []>} : vector<8x32xf32>, vector<32x128xf32>, vector<8x128xf32> -> vector<8x128xf32>
    %9 = arith.addf %7, %8 : vector<8x128xf32>
    %10 = arith.negf %9 : vector<8x128xf32>
    %11 = math.exp %10 : vector<8x128xf32>
    %cst_12 = arith.constant 1.000000e+00 : f32
    %12 = vector.broadcast %cst_12 : f32 to vector<8x128xf32>
    %13 = arith.addf %12, %11 : vector<8x128xf32>
    %14 = arith.divf %12, %13 : vector<8x128xf32>
    %15 = math.tanh %9 : vector<8x128xf32>
    %16 = vector.extract_strided_slice %14 {offsets = [0, 32], sizes = [8, 32], strides = [1, 1]} : vector<8x128xf32> to vector<8x32xf32>
    %17 = arith.mulf %16, %6 : vector<8x32xf32>
    %18 = vector.extract_strided_slice %14 {offsets = [0, 0], sizes = [8, 32], strides = [1, 1]} : vector<8x128xf32> to vector<8x32xf32>
    %19 = vector.extract_strided_slice %15 {offsets = [0, 64], sizes = [8, 32], strides = [1, 1]} : vector<8x128xf32> to vector<8x32xf32>
    %20 = arith.mulf %18, %19 : vector<8x32xf32>
    %21 = arith.addf %17, %20 : vector<8x32xf32>
    %22 = vector.extract_strided_slice %14 {offsets = [0, 96], sizes = [8, 32], strides = [1, 1]} : vector<8x128xf32> to vector<8x32xf32>
    %23 = math.tanh %21 : vector<8x32xf32>
    %24 = arith.mulf %22, %23 : vector<8x32xf32>
    %c8 = arith.constant 8 : index
    %c0_13 = arith.constant 0 : index
    %25 = vector.load %arg11[%c8, %c0_13] : memref<160x128xf32, #tpu.memory_space<vmem>>, vector<8x128xf32>
    %cst_14 = arith.constant dense<0.000000e+00> : vector<8x128xf32>
    %26 = tpu.matmul %24, %4, %cst_14 {dimension_numbers = #tpu.dot_dimension_numbers<[1], [0], [0], [1], [0, 0, 1, 1], [], []>} : vector<8x32xf32>, vector<32x128xf32>, vector<8x128xf32> -> vector<8x128xf32>
    %27 = arith.addf %25, %26 : vector<8x128xf32>
    %28 = arith.negf %27 : vector<8x128xf32>
    %29 = math.exp %28 : vector<8x128xf32>
    %cst_15 = arith.constant 1.000000e+00 : f32
    %30 = vector.broadcast %cst_15 : f32 to vector<8x128xf32>
    %31 = arith.addf %30, %29 : vector<8x128xf32>
    %32 = arith.divf %30, %31 : vector<8x128xf32>
    %33 = math.tanh %27 : vector<8x128xf32>
    %34 = vector.extract_strided_slice %32 {offsets = [0, 32], sizes = [8, 32], strides = [1, 1]} : vector<8x128xf32> to vector<8x32xf32>
    %35 = arith.mulf %34, %21 : vector<8x32xf32>
    %36 = vector.extract_strided_slice %32 {offsets = [0, 0], sizes = [8, 32], strides = [1, 1]} : vector<8x128xf32> to vector<8x32xf32>
    %37 = vector.extract_strided_slice %33 {offsets = [0, 64], sizes = [8, 32], strides = [1, 1]} : vector<8x128xf32> to vector<8x32xf32>
    %38 = arith.mulf %36, %37 : vector<8x32xf32>
    %39 = arith.addf %35, %38 : vector<8x32xf32>
    %40 = vector.extract_strided_slice %32 {offsets = [0, 96], sizes = [8, 32], strides = [1, 1]} : vector<8x128xf32> to vector<8x32xf32>
    %41 = math.tanh %39 : vector<8x32xf32>
    %42 = arith.mulf %40, %41 : vector<8x32xf32>
    %c16 = arith.constant 16 : index
    %c0_16 = arith.constant 0 : index
    %43 = vector.load %arg11[%c16, %c0_16] : memref<160x128xf32, #tpu.memory_space<vmem>>, vector<8x128xf32>
    %cst_17 = arith.constant dense<0.000000e+00> : vector<8x128xf32>
    %44 = tpu.matmul %42, %4, %cst_17 {dimension_numbers = #tpu.dot_dimension_numbers<[1], [0], [0], [1], [0, 0, 1, 1], [], []>} : vector<8x32xf32>, vector<32x128xf32>, vector<8x128xf32> -> vector<8x128xf32>
    %45 = arith.addf %43, %44 : vector<8x128xf32>
    %46 = arith.negf %45 : vector<8x128xf32>
    %47 = math.exp %46 : vector<8x128xf32>
    %cst_18 = arith.constant 1.000000e+00 : f32
    %48 = vector.broadcast %cst_18 : f32 to vector<8x128xf32>
    %49 = arith.addf %48, %47 : vector<8x128xf32>
    %50 = arith.divf %48, %49 : vector<8x128xf32>
    %51 = math.tanh %45 : vector<8x128xf32>
    %52 = vector.extract_strided_slice %50 {offsets = [0, 32], sizes = [8, 32], strides = [1, 1]} : vector<8x128xf32> to vector<8x32xf32>
    %53 = arith.mulf %52, %39 : vector<8x32xf32>
    %54 = vector.extract_strided_slice %50 {offsets = [0, 0], sizes = [8, 32], strides = [1, 1]} : vector<8x128xf32> to vector<8x32xf32>
    %55 = vector.extract_strided_slice %51 {offsets = [0, 64], sizes = [8, 32], strides = [1, 1]} : vector<8x128xf32> to vector<8x32xf32>
    %56 = arith.mulf %54, %55 : vector<8x32xf32>
    %57 = arith.addf %53, %56 : vector<8x32xf32>
    %58 = vector.extract_strided_slice %50 {offsets = [0, 96], sizes = [8, 32], strides = [1, 1]} : vector<8x128xf32> to vector<8x32xf32>
    %59 = math.tanh %57 : vector<8x32xf32>
    %60 = arith.mulf %58, %59 : vector<8x32xf32>
    %c24 = arith.constant 24 : index
    %c0_19 = arith.constant 0 : index
    %61 = vector.load %arg11[%c24, %c0_19] : memref<160x128xf32, #tpu.memory_space<vmem>>, vector<8x128xf32>
    %cst_20 = arith.constant dense<0.000000e+00> : vector<8x128xf32>
    %62 = tpu.matmul %60, %4, %cst_20 {dimension_numbers = #tpu.dot_dimension_numbers<[1], [0], [0], [1], [0, 0, 1, 1], [], []>} : vector<8x32xf32>, vector<32x128xf32>, vector<8x128xf32> -> vector<8x128xf32>
    %63 = arith.addf %61, %62 : vector<8x128xf32>
    %64 = arith.negf %63 : vector<8x128xf32>
    %65 = math.exp %64 : vector<8x128xf32>
    %cst_21 = arith.constant 1.000000e+00 : f32
    %66 = vector.broadcast %cst_21 : f32 to vector<8x128xf32>
    %67 = arith.addf %66, %65 : vector<8x128xf32>
    %68 = arith.divf %66, %67 : vector<8x128xf32>
    %69 = math.tanh %63 : vector<8x128xf32>
    %70 = vector.extract_strided_slice %68 {offsets = [0, 32], sizes = [8, 32], strides = [1, 1]} : vector<8x128xf32> to vector<8x32xf32>
    %71 = arith.mulf %70, %57 : vector<8x32xf32>
    %72 = vector.extract_strided_slice %68 {offsets = [0, 0], sizes = [8, 32], strides = [1, 1]} : vector<8x128xf32> to vector<8x32xf32>
    %73 = vector.extract_strided_slice %69 {offsets = [0, 64], sizes = [8, 32], strides = [1, 1]} : vector<8x128xf32> to vector<8x32xf32>
    %74 = arith.mulf %72, %73 : vector<8x32xf32>
    %75 = arith.addf %71, %74 : vector<8x32xf32>
    %76 = vector.extract_strided_slice %68 {offsets = [0, 96], sizes = [8, 32], strides = [1, 1]} : vector<8x128xf32> to vector<8x32xf32>
    %77 = math.tanh %75 : vector<8x32xf32>
    %78 = arith.mulf %76, %77 : vector<8x32xf32>
    %c32 = arith.constant 32 : index
    %c0_22 = arith.constant 0 : index
    %79 = vector.load %arg11[%c32, %c0_22] : memref<160x128xf32, #tpu.memory_space<vmem>>, vector<8x128xf32>
    %cst_23 = arith.constant dense<0.000000e+00> : vector<8x128xf32>
    %80 = tpu.matmul %78, %4, %cst_23 {dimension_numbers = #tpu.dot_dimension_numbers<[1], [0], [0], [1], [0, 0, 1, 1], [], []>} : vector<8x32xf32>, vector<32x128xf32>, vector<8x128xf32> -> vector<8x128xf32>
    %81 = arith.addf %79, %80 : vector<8x128xf32>
    %82 = arith.negf %81 : vector<8x128xf32>
    %83 = math.exp %82 : vector<8x128xf32>
    %cst_24 = arith.constant 1.000000e+00 : f32
    %84 = vector.broadcast %cst_24 : f32 to vector<8x128xf32>
    %85 = arith.addf %84, %83 : vector<8x128xf32>
    %86 = arith.divf %84, %85 : vector<8x128xf32>
    %87 = math.tanh %81 : vector<8x128xf32>
    %88 = vector.extract_strided_slice %86 {offsets = [0, 32], sizes = [8, 32], strides = [1, 1]} : vector<8x128xf32> to vector<8x32xf32>
    %89 = arith.mulf %88, %75 : vector<8x32xf32>
    %90 = vector.extract_strided_slice %86 {offsets = [0, 0], sizes = [8, 32], strides = [1, 1]} : vector<8x128xf32> to vector<8x32xf32>
    %91 = vector.extract_strided_slice %87 {offsets = [0, 64], sizes = [8, 32], strides = [1, 1]} : vector<8x128xf32> to vector<8x32xf32>
    %92 = arith.mulf %90, %91 : vector<8x32xf32>
    %93 = arith.addf %89, %92 : vector<8x32xf32>
    %94 = vector.extract_strided_slice %86 {offsets = [0, 96], sizes = [8, 32], strides = [1, 1]} : vector<8x128xf32> to vector<8x32xf32>
    %95 = math.tanh %93 : vector<8x32xf32>
    %96 = arith.mulf %94, %95 : vector<8x32xf32>
    %c40 = arith.constant 40 : index
    %c0_25 = arith.constant 0 : index
    %97 = vector.load %arg11[%c40, %c0_25] : memref<160x128xf32, #tpu.memory_space<vmem>>, vector<8x128xf32>
    %cst_26 = arith.constant dense<0.000000e+00> : vector<8x128xf32>
    %98 = tpu.matmul %96, %4, %cst_26 {dimension_numbers = #tpu.dot_dimension_numbers<[1], [0], [0], [1], [0, 0, 1, 1], [], []>} : vector<8x32xf32>, vector<32x128xf32>, vector<8x128xf32> -> vector<8x128xf32>
    %99 = arith.addf %97, %98 : vector<8x128xf32>
    %100 = arith.negf %99 : vector<8x128xf32>
    %101 = math.exp %100 : vector<8x128xf32>
    %cst_27 = arith.constant 1.000000e+00 : f32
    %102 = vector.broadcast %cst_27 : f32 to vector<8x128xf32>
    %103 = arith.addf %102, %101 : vector<8x128xf32>
    %104 = arith.divf %102, %103 : vector<8x128xf32>
    %105 = math.tanh %99 : vector<8x128xf32>
    %106 = vector.extract_strided_slice %104 {offsets = [0, 32], sizes = [8, 32], strides = [1, 1]} : vector<8x128xf32> to vector<8x32xf32>
    %107 = arith.mulf %106, %93 : vector<8x32xf32>
    %108 = vector.extract_strided_slice %104 {offsets = [0, 0], sizes = [8, 32], strides = [1, 1]} : vector<8x128xf32> to vector<8x32xf32>
    %109 = vector.extract_strided_slice %105 {offsets = [0, 64], sizes = [8, 32], strides = [1, 1]} : vector<8x128xf32> to vector<8x32xf32>
    %110 = arith.mulf %108, %109 : vector<8x32xf32>
    %111 = arith.addf %107, %110 : vector<8x32xf32>
    %112 = vector.extract_strided_slice %104 {offsets = [0, 96], sizes = [8, 32], strides = [1, 1]} : vector<8x128xf32> to vector<8x32xf32>
    %113 = math.tanh %111 : vector<8x32xf32>
    %114 = arith.mulf %112, %113 : vector<8x32xf32>
    %c48 = arith.constant 48 : index
    %c0_28 = arith.constant 0 : index
    %115 = vector.load %arg11[%c48, %c0_28] : memref<160x128xf32, #tpu.memory_space<vmem>>, vector<8x128xf32>
    %cst_29 = arith.constant dense<0.000000e+00> : vector<8x128xf32>
    %116 = tpu.matmul %114, %4, %cst_29 {dimension_numbers = #tpu.dot_dimension_numbers<[1], [0], [0], [1], [0, 0, 1, 1], [], []>} : vector<8x32xf32>, vector<32x128xf32>, vector<8x128xf32> -> vector<8x128xf32>
    %117 = arith.addf %115, %116 : vector<8x128xf32>
    %118 = arith.negf %117 : vector<8x128xf32>
    %119 = math.exp %118 : vector<8x128xf32>
    %cst_30 = arith.constant 1.000000e+00 : f32
    %120 = vector.broadcast %cst_30 : f32 to vector<8x128xf32>
    %121 = arith.addf %120, %119 : vector<8x128xf32>
    %122 = arith.divf %120, %121 : vector<8x128xf32>
    %123 = math.tanh %117 : vector<8x128xf32>
    %124 = vector.extract_strided_slice %122 {offsets = [0, 32], sizes = [8, 32], strides = [1, 1]} : vector<8x128xf32> to vector<8x32xf32>
    %125 = arith.mulf %124, %111 : vector<8x32xf32>
    %126 = vector.extract_strided_slice %122 {offsets = [0, 0], sizes = [8, 32], strides = [1, 1]} : vector<8x128xf32> to vector<8x32xf32>
    %127 = vector.extract_strided_slice %123 {offsets = [0, 64], sizes = [8, 32], strides = [1, 1]} : vector<8x128xf32> to vector<8x32xf32>
    %128 = arith.mulf %126, %127 : vector<8x32xf32>
    %129 = arith.addf %125, %128 : vector<8x32xf32>
    %130 = vector.extract_strided_slice %122 {offsets = [0, 96], sizes = [8, 32], strides = [1, 1]} : vector<8x128xf32> to vector<8x32xf32>
    %131 = math.tanh %129 : vector<8x32xf32>
    %132 = arith.mulf %130, %131 : vector<8x32xf32>
    %c56 = arith.constant 56 : index
    %c0_31 = arith.constant 0 : index
    %133 = vector.load %arg11[%c56, %c0_31] : memref<160x128xf32, #tpu.memory_space<vmem>>, vector<8x128xf32>
    %cst_32 = arith.constant dense<0.000000e+00> : vector<8x128xf32>
    %134 = tpu.matmul %132, %4, %cst_32 {dimension_numbers = #tpu.dot_dimension_numbers<[1], [0], [0], [1], [0, 0, 1, 1], [], []>} : vector<8x32xf32>, vector<32x128xf32>, vector<8x128xf32> -> vector<8x128xf32>
    %135 = arith.addf %133, %134 : vector<8x128xf32>
    %136 = arith.negf %135 : vector<8x128xf32>
    %137 = math.exp %136 : vector<8x128xf32>
    %cst_33 = arith.constant 1.000000e+00 : f32
    %138 = vector.broadcast %cst_33 : f32 to vector<8x128xf32>
    %139 = arith.addf %138, %137 : vector<8x128xf32>
    %140 = arith.divf %138, %139 : vector<8x128xf32>
    %141 = math.tanh %135 : vector<8x128xf32>
    %142 = vector.extract_strided_slice %140 {offsets = [0, 32], sizes = [8, 32], strides = [1, 1]} : vector<8x128xf32> to vector<8x32xf32>
    %143 = arith.mulf %142, %129 : vector<8x32xf32>
    %144 = vector.extract_strided_slice %140 {offsets = [0, 0], sizes = [8, 32], strides = [1, 1]} : vector<8x128xf32> to vector<8x32xf32>
    %145 = vector.extract_strided_slice %141 {offsets = [0, 64], sizes = [8, 32], strides = [1, 1]} : vector<8x128xf32> to vector<8x32xf32>
    %146 = arith.mulf %144, %145 : vector<8x32xf32>
    %147 = arith.addf %143, %146 : vector<8x32xf32>
    %148 = vector.extract_strided_slice %140 {offsets = [0, 96], sizes = [8, 32], strides = [1, 1]} : vector<8x128xf32> to vector<8x32xf32>
    %149 = math.tanh %147 : vector<8x32xf32>
    %150 = arith.mulf %148, %149 : vector<8x32xf32>
    %c64 = arith.constant 64 : index
    %c0_34 = arith.constant 0 : index
    %151 = vector.load %arg11[%c64, %c0_34] : memref<160x128xf32, #tpu.memory_space<vmem>>, vector<8x128xf32>
    %cst_35 = arith.constant dense<0.000000e+00> : vector<8x128xf32>
    %152 = tpu.matmul %150, %4, %cst_35 {dimension_numbers = #tpu.dot_dimension_numbers<[1], [0], [0], [1], [0, 0, 1, 1], [], []>} : vector<8x32xf32>, vector<32x128xf32>, vector<8x128xf32> -> vector<8x128xf32>
    %153 = arith.addf %151, %152 : vector<8x128xf32>
    %154 = arith.negf %153 : vector<8x128xf32>
    %155 = math.exp %154 : vector<8x128xf32>
    %cst_36 = arith.constant 1.000000e+00 : f32
    %156 = vector.broadcast %cst_36 : f32 to vector<8x128xf32>
    %157 = arith.addf %156, %155 : vector<8x128xf32>
    %158 = arith.divf %156, %157 : vector<8x128xf32>
    %159 = math.tanh %153 : vector<8x128xf32>
    %160 = vector.extract_strided_slice %158 {offsets = [0, 32], sizes = [8, 32], strides = [1, 1]} : vector<8x128xf32> to vector<8x32xf32>
    %161 = arith.mulf %160, %147 : vector<8x32xf32>
    %162 = vector.extract_strided_slice %158 {offsets = [0, 0], sizes = [8, 32], strides = [1, 1]} : vector<8x128xf32> to vector<8x32xf32>
    %163 = vector.extract_strided_slice %159 {offsets = [0, 64], sizes = [8, 32], strides = [1, 1]} : vector<8x128xf32> to vector<8x32xf32>
    %164 = arith.mulf %162, %163 : vector<8x32xf32>
    %165 = arith.addf %161, %164 : vector<8x32xf32>
    %166 = vector.extract_strided_slice %158 {offsets = [0, 96], sizes = [8, 32], strides = [1, 1]} : vector<8x128xf32> to vector<8x32xf32>
    %167 = math.tanh %165 : vector<8x32xf32>
    %168 = arith.mulf %166, %167 : vector<8x32xf32>
    %c72 = arith.constant 72 : index
    %c0_37 = arith.constant 0 : index
    %169 = vector.load %arg11[%c72, %c0_37] : memref<160x128xf32, #tpu.memory_space<vmem>>, vector<8x128xf32>
    %cst_38 = arith.constant dense<0.000000e+00> : vector<8x128xf32>
    %170 = tpu.matmul %168, %4, %cst_38 {dimension_numbers = #tpu.dot_dimension_numbers<[1], [0], [0], [1], [0, 0, 1, 1], [], []>} : vector<8x32xf32>, vector<32x128xf32>, vector<8x128xf32> -> vector<8x128xf32>
    %171 = arith.addf %169, %170 : vector<8x128xf32>
    %172 = arith.negf %171 : vector<8x128xf32>
    %173 = math.exp %172 : vector<8x128xf32>
    %cst_39 = arith.constant 1.000000e+00 : f32
    %174 = vector.broadcast %cst_39 : f32 to vector<8x128xf32>
    %175 = arith.addf %174, %173 : vector<8x128xf32>
    %176 = arith.divf %174, %175 : vector<8x128xf32>
    %177 = math.tanh %171 : vector<8x128xf32>
    %178 = vector.extract_strided_slice %176 {offsets = [0, 32], sizes = [8, 32], strides = [1, 1]} : vector<8x128xf32> to vector<8x32xf32>
    %179 = arith.mulf %178, %165 : vector<8x32xf32>
    %180 = vector.extract_strided_slice %176 {offsets = [0, 0], sizes = [8, 32], strides = [1, 1]} : vector<8x128xf32> to vector<8x32xf32>
    %181 = vector.extract_strided_slice %177 {offsets = [0, 64], sizes = [8, 32], strides = [1, 1]} : vector<8x128xf32> to vector<8x32xf32>
    %182 = arith.mulf %180, %181 : vector<8x32xf32>
    %183 = arith.addf %179, %182 : vector<8x32xf32>
    %184 = vector.extract_strided_slice %176 {offsets = [0, 96], sizes = [8, 32], strides = [1, 1]} : vector<8x128xf32> to vector<8x32xf32>
    %185 = math.tanh %183 : vector<8x32xf32>
    %186 = arith.mulf %184, %185 : vector<8x32xf32>
    %c80 = arith.constant 80 : index
    %c0_40 = arith.constant 0 : index
    %187 = vector.load %arg11[%c80, %c0_40] : memref<160x128xf32, #tpu.memory_space<vmem>>, vector<8x128xf32>
    %cst_41 = arith.constant dense<0.000000e+00> : vector<8x128xf32>
    %188 = tpu.matmul %186, %4, %cst_41 {dimension_numbers = #tpu.dot_dimension_numbers<[1], [0], [0], [1], [0, 0, 1, 1], [], []>} : vector<8x32xf32>, vector<32x128xf32>, vector<8x128xf32> -> vector<8x128xf32>
    %189 = arith.addf %187, %188 : vector<8x128xf32>
    %190 = arith.negf %189 : vector<8x128xf32>
    %191 = math.exp %190 : vector<8x128xf32>
    %cst_42 = arith.constant 1.000000e+00 : f32
    %192 = vector.broadcast %cst_42 : f32 to vector<8x128xf32>
    %193 = arith.addf %192, %191 : vector<8x128xf32>
    %194 = arith.divf %192, %193 : vector<8x128xf32>
    %195 = math.tanh %189 : vector<8x128xf32>
    %196 = vector.extract_strided_slice %194 {offsets = [0, 32], sizes = [8, 32], strides = [1, 1]} : vector<8x128xf32> to vector<8x32xf32>
    %197 = arith.mulf %196, %183 : vector<8x32xf32>
    %198 = vector.extract_strided_slice %194 {offsets = [0, 0], sizes = [8, 32], strides = [1, 1]} : vector<8x128xf32> to vector<8x32xf32>
    %199 = vector.extract_strided_slice %195 {offsets = [0, 64], sizes = [8, 32], strides = [1, 1]} : vector<8x128xf32> to vector<8x32xf32>
    %200 = arith.mulf %198, %199 : vector<8x32xf32>
    %201 = arith.addf %197, %200 : vector<8x32xf32>
    %202 = vector.extract_strided_slice %194 {offsets = [0, 96], sizes = [8, 32], strides = [1, 1]} : vector<8x128xf32> to vector<8x32xf32>
    %203 = math.tanh %201 : vector<8x32xf32>
    %204 = arith.mulf %202, %203 : vector<8x32xf32>
    %c88 = arith.constant 88 : index
    %c0_43 = arith.constant 0 : index
    %205 = vector.load %arg11[%c88, %c0_43] : memref<160x128xf32, #tpu.memory_space<vmem>>, vector<8x128xf32>
    %cst_44 = arith.constant dense<0.000000e+00> : vector<8x128xf32>
    %206 = tpu.matmul %204, %4, %cst_44 {dimension_numbers = #tpu.dot_dimension_numbers<[1], [0], [0], [1], [0, 0, 1, 1], [], []>} : vector<8x32xf32>, vector<32x128xf32>, vector<8x128xf32> -> vector<8x128xf32>
    %207 = arith.addf %205, %206 : vector<8x128xf32>
    %208 = arith.negf %207 : vector<8x128xf32>
    %209 = math.exp %208 : vector<8x128xf32>
    %cst_45 = arith.constant 1.000000e+00 : f32
    %210 = vector.broadcast %cst_45 : f32 to vector<8x128xf32>
    %211 = arith.addf %210, %209 : vector<8x128xf32>
    %212 = arith.divf %210, %211 : vector<8x128xf32>
    %213 = math.tanh %207 : vector<8x128xf32>
    %214 = vector.extract_strided_slice %212 {offsets = [0, 32], sizes = [8, 32], strides = [1, 1]} : vector<8x128xf32> to vector<8x32xf32>
    %215 = arith.mulf %214, %201 : vector<8x32xf32>
    %216 = vector.extract_strided_slice %212 {offsets = [0, 0], sizes = [8, 32], strides = [1, 1]} : vector<8x128xf32> to vector<8x32xf32>
    %217 = vector.extract_strided_slice %213 {offsets = [0, 64], sizes = [8, 32], strides = [1, 1]} : vector<8x128xf32> to vector<8x32xf32>
    %218 = arith.mulf %216, %217 : vector<8x32xf32>
    %219 = arith.addf %215, %218 : vector<8x32xf32>
    %220 = vector.extract_strided_slice %212 {offsets = [0, 96], sizes = [8, 32], strides = [1, 1]} : vector<8x128xf32> to vector<8x32xf32>
    %221 = math.tanh %219 : vector<8x32xf32>
    %222 = arith.mulf %220, %221 : vector<8x32xf32>
    %c96 = arith.constant 96 : index
    %c0_46 = arith.constant 0 : index
    %223 = vector.load %arg11[%c96, %c0_46] : memref<160x128xf32, #tpu.memory_space<vmem>>, vector<8x128xf32>
    %cst_47 = arith.constant dense<0.000000e+00> : vector<8x128xf32>
    %224 = tpu.matmul %222, %4, %cst_47 {dimension_numbers = #tpu.dot_dimension_numbers<[1], [0], [0], [1], [0, 0, 1, 1], [], []>} : vector<8x32xf32>, vector<32x128xf32>, vector<8x128xf32> -> vector<8x128xf32>
    %225 = arith.addf %223, %224 : vector<8x128xf32>
    %226 = arith.negf %225 : vector<8x128xf32>
    %227 = math.exp %226 : vector<8x128xf32>
    %cst_48 = arith.constant 1.000000e+00 : f32
    %228 = vector.broadcast %cst_48 : f32 to vector<8x128xf32>
    %229 = arith.addf %228, %227 : vector<8x128xf32>
    %230 = arith.divf %228, %229 : vector<8x128xf32>
    %231 = math.tanh %225 : vector<8x128xf32>
    %232 = vector.extract_strided_slice %230 {offsets = [0, 32], sizes = [8, 32], strides = [1, 1]} : vector<8x128xf32> to vector<8x32xf32>
    %233 = arith.mulf %232, %219 : vector<8x32xf32>
    %234 = vector.extract_strided_slice %230 {offsets = [0, 0], sizes = [8, 32], strides = [1, 1]} : vector<8x128xf32> to vector<8x32xf32>
    %235 = vector.extract_strided_slice %231 {offsets = [0, 64], sizes = [8, 32], strides = [1, 1]} : vector<8x128xf32> to vector<8x32xf32>
    %236 = arith.mulf %234, %235 : vector<8x32xf32>
    %237 = arith.addf %233, %236 : vector<8x32xf32>
    %238 = vector.extract_strided_slice %230 {offsets = [0, 96], sizes = [8, 32], strides = [1, 1]} : vector<8x128xf32> to vector<8x32xf32>
    %239 = math.tanh %237 : vector<8x32xf32>
    %240 = arith.mulf %238, %239 : vector<8x32xf32>
    %c104 = arith.constant 104 : index
    %c0_49 = arith.constant 0 : index
    %241 = vector.load %arg11[%c104, %c0_49] : memref<160x128xf32, #tpu.memory_space<vmem>>, vector<8x128xf32>
    %cst_50 = arith.constant dense<0.000000e+00> : vector<8x128xf32>
    %242 = tpu.matmul %240, %4, %cst_50 {dimension_numbers = #tpu.dot_dimension_numbers<[1], [0], [0], [1], [0, 0, 1, 1], [], []>} : vector<8x32xf32>, vector<32x128xf32>, vector<8x128xf32> -> vector<8x128xf32>
    %243 = arith.addf %241, %242 : vector<8x128xf32>
    %244 = arith.negf %243 : vector<8x128xf32>
    %245 = math.exp %244 : vector<8x128xf32>
    %cst_51 = arith.constant 1.000000e+00 : f32
    %246 = vector.broadcast %cst_51 : f32 to vector<8x128xf32>
    %247 = arith.addf %246, %245 : vector<8x128xf32>
    %248 = arith.divf %246, %247 : vector<8x128xf32>
    %249 = math.tanh %243 : vector<8x128xf32>
    %250 = vector.extract_strided_slice %248 {offsets = [0, 32], sizes = [8, 32], strides = [1, 1]} : vector<8x128xf32> to vector<8x32xf32>
    %251 = arith.mulf %250, %237 : vector<8x32xf32>
    %252 = vector.extract_strided_slice %248 {offsets = [0, 0], sizes = [8, 32], strides = [1, 1]} : vector<8x128xf32> to vector<8x32xf32>
    %253 = vector.extract_strided_slice %249 {offsets = [0, 64], sizes = [8, 32], strides = [1, 1]} : vector<8x128xf32> to vector<8x32xf32>
    %254 = arith.mulf %252, %253 : vector<8x32xf32>
    %255 = arith.addf %251, %254 : vector<8x32xf32>
    %256 = vector.extract_strided_slice %248 {offsets = [0, 96], sizes = [8, 32], strides = [1, 1]} : vector<8x128xf32> to vector<8x32xf32>
    %257 = math.tanh %255 : vector<8x32xf32>
    %258 = arith.mulf %256, %257 : vector<8x32xf32>
    %c112 = arith.constant 112 : index
    %c0_52 = arith.constant 0 : index
    %259 = vector.load %arg11[%c112, %c0_52] : memref<160x128xf32, #tpu.memory_space<vmem>>, vector<8x128xf32>
    %cst_53 = arith.constant dense<0.000000e+00> : vector<8x128xf32>
    %260 = tpu.matmul %258, %4, %cst_53 {dimension_numbers = #tpu.dot_dimension_numbers<[1], [0], [0], [1], [0, 0, 1, 1], [], []>} : vector<8x32xf32>, vector<32x128xf32>, vector<8x128xf32> -> vector<8x128xf32>
    %261 = arith.addf %259, %260 : vector<8x128xf32>
    %262 = arith.negf %261 : vector<8x128xf32>
    %263 = math.exp %262 : vector<8x128xf32>
    %cst_54 = arith.constant 1.000000e+00 : f32
    %264 = vector.broadcast %cst_54 : f32 to vector<8x128xf32>
    %265 = arith.addf %264, %263 : vector<8x128xf32>
    %266 = arith.divf %264, %265 : vector<8x128xf32>
    %267 = math.tanh %261 : vector<8x128xf32>
    %268 = vector.extract_strided_slice %266 {offsets = [0, 32], sizes = [8, 32], strides = [1, 1]} : vector<8x128xf32> to vector<8x32xf32>
    %269 = arith.mulf %268, %255 : vector<8x32xf32>
    %270 = vector.extract_strided_slice %266 {offsets = [0, 0], sizes = [8, 32], strides = [1, 1]} : vector<8x128xf32> to vector<8x32xf32>
    %271 = vector.extract_strided_slice %267 {offsets = [0, 64], sizes = [8, 32], strides = [1, 1]} : vector<8x128xf32> to vector<8x32xf32>
    %272 = arith.mulf %270, %271 : vector<8x32xf32>
    %273 = arith.addf %269, %272 : vector<8x32xf32>
    %274 = vector.extract_strided_slice %266 {offsets = [0, 96], sizes = [8, 32], strides = [1, 1]} : vector<8x128xf32> to vector<8x32xf32>
    %275 = math.tanh %273 : vector<8x32xf32>
    %276 = arith.mulf %274, %275 : vector<8x32xf32>
    %c120 = arith.constant 120 : index
    %c0_55 = arith.constant 0 : index
    %277 = vector.load %arg11[%c120, %c0_55] : memref<160x128xf32, #tpu.memory_space<vmem>>, vector<8x128xf32>
    %cst_56 = arith.constant dense<0.000000e+00> : vector<8x128xf32>
    %278 = tpu.matmul %276, %4, %cst_56 {dimension_numbers = #tpu.dot_dimension_numbers<[1], [0], [0], [1], [0, 0, 1, 1], [], []>} : vector<8x32xf32>, vector<32x128xf32>, vector<8x128xf32> -> vector<8x128xf32>
    %279 = arith.addf %277, %278 : vector<8x128xf32>
    %280 = arith.negf %279 : vector<8x128xf32>
    %281 = math.exp %280 : vector<8x128xf32>
    %cst_57 = arith.constant 1.000000e+00 : f32
    %282 = vector.broadcast %cst_57 : f32 to vector<8x128xf32>
    %283 = arith.addf %282, %281 : vector<8x128xf32>
    %284 = arith.divf %282, %283 : vector<8x128xf32>
    %285 = math.tanh %279 : vector<8x128xf32>
    %286 = vector.extract_strided_slice %284 {offsets = [0, 32], sizes = [8, 32], strides = [1, 1]} : vector<8x128xf32> to vector<8x32xf32>
    %287 = arith.mulf %286, %273 : vector<8x32xf32>
    %288 = vector.extract_strided_slice %284 {offsets = [0, 0], sizes = [8, 32], strides = [1, 1]} : vector<8x128xf32> to vector<8x32xf32>
    %289 = vector.extract_strided_slice %285 {offsets = [0, 64], sizes = [8, 32], strides = [1, 1]} : vector<8x128xf32> to vector<8x32xf32>
    %290 = arith.mulf %288, %289 : vector<8x32xf32>
    %291 = arith.addf %287, %290 : vector<8x32xf32>
    %292 = vector.extract_strided_slice %284 {offsets = [0, 96], sizes = [8, 32], strides = [1, 1]} : vector<8x128xf32> to vector<8x32xf32>
    %293 = math.tanh %291 : vector<8x32xf32>
    %294 = arith.mulf %292, %293 : vector<8x32xf32>
    %c128 = arith.constant 128 : index
    %c0_58 = arith.constant 0 : index
    %295 = vector.load %arg11[%c128, %c0_58] : memref<160x128xf32, #tpu.memory_space<vmem>>, vector<8x128xf32>
    %cst_59 = arith.constant dense<0.000000e+00> : vector<8x128xf32>
    %296 = tpu.matmul %294, %4, %cst_59 {dimension_numbers = #tpu.dot_dimension_numbers<[1], [0], [0], [1], [0, 0, 1, 1], [], []>} : vector<8x32xf32>, vector<32x128xf32>, vector<8x128xf32> -> vector<8x128xf32>
    %297 = arith.addf %295, %296 : vector<8x128xf32>
    %298 = arith.negf %297 : vector<8x128xf32>
    %299 = math.exp %298 : vector<8x128xf32>
    %cst_60 = arith.constant 1.000000e+00 : f32
    %300 = vector.broadcast %cst_60 : f32 to vector<8x128xf32>
    %301 = arith.addf %300, %299 : vector<8x128xf32>
    %302 = arith.divf %300, %301 : vector<8x128xf32>
    %303 = math.tanh %297 : vector<8x128xf32>
    %304 = vector.extract_strided_slice %302 {offsets = [0, 32], sizes = [8, 32], strides = [1, 1]} : vector<8x128xf32> to vector<8x32xf32>
    %305 = arith.mulf %304, %291 : vector<8x32xf32>
    %306 = vector.extract_strided_slice %302 {offsets = [0, 0], sizes = [8, 32], strides = [1, 1]} : vector<8x128xf32> to vector<8x32xf32>
    %307 = vector.extract_strided_slice %303 {offsets = [0, 64], sizes = [8, 32], strides = [1, 1]} : vector<8x128xf32> to vector<8x32xf32>
    %308 = arith.mulf %306, %307 : vector<8x32xf32>
    %309 = arith.addf %305, %308 : vector<8x32xf32>
    %310 = vector.extract_strided_slice %302 {offsets = [0, 96], sizes = [8, 32], strides = [1, 1]} : vector<8x128xf32> to vector<8x32xf32>
    %311 = math.tanh %309 : vector<8x32xf32>
    %312 = arith.mulf %310, %311 : vector<8x32xf32>
    %c136 = arith.constant 136 : index
    %c0_61 = arith.constant 0 : index
    %313 = vector.load %arg11[%c136, %c0_61] : memref<160x128xf32, #tpu.memory_space<vmem>>, vector<8x128xf32>
    %cst_62 = arith.constant dense<0.000000e+00> : vector<8x128xf32>
    %314 = tpu.matmul %312, %4, %cst_62 {dimension_numbers = #tpu.dot_dimension_numbers<[1], [0], [0], [1], [0, 0, 1, 1], [], []>} : vector<8x32xf32>, vector<32x128xf32>, vector<8x128xf32> -> vector<8x128xf32>
    %315 = arith.addf %313, %314 : vector<8x128xf32>
    %316 = arith.negf %315 : vector<8x128xf32>
    %317 = math.exp %316 : vector<8x128xf32>
    %cst_63 = arith.constant 1.000000e+00 : f32
    %318 = vector.broadcast %cst_63 : f32 to vector<8x128xf32>
    %319 = arith.addf %318, %317 : vector<8x128xf32>
    %320 = arith.divf %318, %319 : vector<8x128xf32>
    %321 = math.tanh %315 : vector<8x128xf32>
    %322 = vector.extract_strided_slice %320 {offsets = [0, 32], sizes = [8, 32], strides = [1, 1]} : vector<8x128xf32> to vector<8x32xf32>
    %323 = arith.mulf %322, %309 : vector<8x32xf32>
    %324 = vector.extract_strided_slice %320 {offsets = [0, 0], sizes = [8, 32], strides = [1, 1]} : vector<8x128xf32> to vector<8x32xf32>
    %325 = vector.extract_strided_slice %321 {offsets = [0, 64], sizes = [8, 32], strides = [1, 1]} : vector<8x128xf32> to vector<8x32xf32>
    %326 = arith.mulf %324, %325 : vector<8x32xf32>
    %327 = arith.addf %323, %326 : vector<8x32xf32>
    %328 = vector.extract_strided_slice %320 {offsets = [0, 96], sizes = [8, 32], strides = [1, 1]} : vector<8x128xf32> to vector<8x32xf32>
    %329 = math.tanh %327 : vector<8x32xf32>
    %330 = arith.mulf %328, %329 : vector<8x32xf32>
    %c144 = arith.constant 144 : index
    %c0_64 = arith.constant 0 : index
    %331 = vector.load %arg11[%c144, %c0_64] : memref<160x128xf32, #tpu.memory_space<vmem>>, vector<8x128xf32>
    %cst_65 = arith.constant dense<0.000000e+00> : vector<8x128xf32>
    %332 = tpu.matmul %330, %4, %cst_65 {dimension_numbers = #tpu.dot_dimension_numbers<[1], [0], [0], [1], [0, 0, 1, 1], [], []>} : vector<8x32xf32>, vector<32x128xf32>, vector<8x128xf32> -> vector<8x128xf32>
    %333 = arith.addf %331, %332 : vector<8x128xf32>
    %334 = arith.negf %333 : vector<8x128xf32>
    %335 = math.exp %334 : vector<8x128xf32>
    %cst_66 = arith.constant 1.000000e+00 : f32
    %336 = vector.broadcast %cst_66 : f32 to vector<8x128xf32>
    %337 = arith.addf %336, %335 : vector<8x128xf32>
    %338 = arith.divf %336, %337 : vector<8x128xf32>
    %339 = math.tanh %333 : vector<8x128xf32>
    %340 = vector.extract_strided_slice %338 {offsets = [0, 32], sizes = [8, 32], strides = [1, 1]} : vector<8x128xf32> to vector<8x32xf32>
    %341 = arith.mulf %340, %327 : vector<8x32xf32>
    %342 = vector.extract_strided_slice %338 {offsets = [0, 0], sizes = [8, 32], strides = [1, 1]} : vector<8x128xf32> to vector<8x32xf32>
    %343 = vector.extract_strided_slice %339 {offsets = [0, 64], sizes = [8, 32], strides = [1, 1]} : vector<8x128xf32> to vector<8x32xf32>
    %344 = arith.mulf %342, %343 : vector<8x32xf32>
    %345 = arith.addf %341, %344 : vector<8x32xf32>
    %346 = vector.extract_strided_slice %338 {offsets = [0, 96], sizes = [8, 32], strides = [1, 1]} : vector<8x128xf32> to vector<8x32xf32>
    %347 = math.tanh %345 : vector<8x32xf32>
    %348 = arith.mulf %346, %347 : vector<8x32xf32>
    %c152 = arith.constant 152 : index
    %c0_67 = arith.constant 0 : index
    %349 = vector.load %arg11[%c152, %c0_67] : memref<160x128xf32, #tpu.memory_space<vmem>>, vector<8x128xf32>
    %cst_68 = arith.constant dense<0.000000e+00> : vector<8x128xf32>
    %350 = tpu.matmul %348, %4, %cst_68 {dimension_numbers = #tpu.dot_dimension_numbers<[1], [0], [0], [1], [0, 0, 1, 1], [], []>} : vector<8x32xf32>, vector<32x128xf32>, vector<8x128xf32> -> vector<8x128xf32>
    %351 = arith.addf %349, %350 : vector<8x128xf32>
    %352 = arith.negf %351 : vector<8x128xf32>
    %353 = math.exp %352 : vector<8x128xf32>
    %cst_69 = arith.constant 1.000000e+00 : f32
    %354 = vector.broadcast %cst_69 : f32 to vector<8x128xf32>
    %355 = arith.addf %354, %353 : vector<8x128xf32>
    %356 = arith.divf %354, %355 : vector<8x128xf32>
    %357 = math.tanh %351 : vector<8x128xf32>
    %358 = vector.extract_strided_slice %356 {offsets = [0, 32], sizes = [8, 32], strides = [1, 1]} : vector<8x128xf32> to vector<8x32xf32>
    %359 = arith.mulf %358, %345 : vector<8x32xf32>
    %360 = vector.extract_strided_slice %356 {offsets = [0, 0], sizes = [8, 32], strides = [1, 1]} : vector<8x128xf32> to vector<8x32xf32>
    %361 = vector.extract_strided_slice %357 {offsets = [0, 64], sizes = [8, 32], strides = [1, 1]} : vector<8x128xf32> to vector<8x32xf32>
    %362 = arith.mulf %360, %361 : vector<8x32xf32>
    %363 = arith.addf %359, %362 : vector<8x32xf32>
    %364 = vector.extract_strided_slice %356 {offsets = [0, 96], sizes = [8, 32], strides = [1, 1]} : vector<8x128xf32> to vector<8x32xf32>
    %365 = math.tanh %363 : vector<8x32xf32>
    %366 = arith.mulf %364, %365 : vector<8x32xf32>
    %c0_70 = arith.constant 0 : index
    %c0_71 = arith.constant 0 : index
    %367 = vector.load %arg3[%c0_70, %c0_71] : memref<32x28xf32, #tpu.memory_space<vmem>>, vector<32x28xf32>
    %cst_72 = arith.constant dense<0.000000e+00> : vector<8x28xf32>
    %368 = tpu.matmul %366, %367, %cst_72 {dimension_numbers = #tpu.dot_dimension_numbers<[1], [0], [0], [1], [0, 0, 1, 1], [], []>} : vector<8x32xf32>, vector<32x28xf32>, vector<8x28xf32> -> vector<8x28xf32>
    %c0_73 = arith.constant 0 : index
    %c0_74 = arith.constant 0 : index
    %369 = vector.load %arg4[%c0_73, %c0_74] : memref<1x28xf32, #tpu.memory_space<vmem>>, vector<1x28xf32>
    %370 = vector.broadcast %369 : vector<1x28xf32> to vector<8x28xf32>
    %371 = arith.addf %368, %370 : vector<8x28xf32>
    %372 = vector.extract_strided_slice %371 {offsets = [0, 0], sizes = [8, 20], strides = [1, 1]} : vector<8x28xf32> to vector<8x20xf32>
    %373 = vector.extract_strided_slice %371 {offsets = [0, 20], sizes = [8, 4], strides = [1, 1]} : vector<8x28xf32> to vector<8x4xf32>
    %374 = vector.extract_strided_slice %371 {offsets = [0, 24], sizes = [8, 4], strides = [1, 1]} : vector<8x28xf32> to vector<8x4xf32>
    %c0_75 = arith.constant 0 : index
    %c0_76 = arith.constant 0 : index
    %375 = vector.load %arg6[%c0_75, %c0_76] : memref<8x20xf32, #tpu.memory_space<vmem>>, vector<8x20xf32>
    %376 = arith.addf %372, %375 : vector<8x20xf32>
    %cst_77 = arith.constant 1.000000e+00 : f32
    %377 = vector.broadcast %cst_77 : f32 to vector<8x20xf32>
    %378 = arith.mulf %376, %377 : vector<8x20xf32>
    %cst_78 = arith.constant dense<0xFF800000> : vector<8xf32>
    %379 = vector.multi_reduction <maximumf>, %378, %cst_78 [1] : vector<8x20xf32> to vector<8xf32>
    %380 = vector.shape_cast %379 : vector<8xf32> to vector<8x1xf32>
    %381 = vector.broadcast %380 : vector<8x1xf32> to vector<8x20xf32>
    %382 = arith.subf %378, %381 : vector<8x20xf32>
    %383 = math.exp %382 : vector<8x20xf32>
    %c0_79 = arith.constant 0 : index
    %c0_80 = arith.constant 0 : index
    %384 = vector.load %arg7[%c0_79, %c0_80] : memref<20x4xf32, #tpu.memory_space<vmem>>, vector<20x4xf32>
    %cst_81 = arith.constant dense<0.000000e+00> : vector<8x4xf32>
    %385 = tpu.matmul %383, %384, %cst_81 {dimension_numbers = #tpu.dot_dimension_numbers<[1], [0], [0], [1], [0, 0, 1, 1], [], []>} : vector<8x20xf32>, vector<20x4xf32>, vector<8x4xf32> -> vector<8x4xf32>
    %c0_82 = arith.constant 0 : index
    %c0_83 = arith.constant 0 : index
    %386 = vector.load %arg5[%c0_82, %c0_83] : memref<8x20xf32, #tpu.memory_space<vmem>>, vector<8x20xf32>
    %387 = arith.mulf %383, %386 : vector<8x20xf32>
    %c0_84 = arith.constant 0 : index
    %c0_85 = arith.constant 0 : index
    %388 = vector.load %arg7[%c0_84, %c0_85] : memref<20x4xf32, #tpu.memory_space<vmem>>, vector<20x4xf32>
    %cst_86 = arith.constant dense<0.000000e+00> : vector<8x4xf32>
    %389 = tpu.matmul %387, %388, %cst_86 {dimension_numbers = #tpu.dot_dimension_numbers<[1], [0], [0], [1], [0, 0, 1, 1], [], []>} : vector<8x20xf32>, vector<20x4xf32>, vector<8x4xf32> -> vector<8x4xf32>
    %390 = arith.divf %389, %385 : vector<8x4xf32>
    %391 = arith.subf %390, %373 : vector<8x4xf32>
    %cst_87 = arith.constant 1.000000e+01 : f32
    %392 = vector.broadcast %cst_87 : f32 to vector<8x4xf32>
    %393 = arith.mulf %391, %392 : vector<8x4xf32>
    %394 = arith.negf %393 : vector<8x4xf32>
    %395 = math.exp %394 : vector<8x4xf32>
    %cst_88 = arith.constant 1.000000e+00 : f32
    %396 = vector.broadcast %cst_88 : f32 to vector<8x4xf32>
    %397 = arith.addf %396, %395 : vector<8x4xf32>
    %398 = arith.divf %396, %397 : vector<8x4xf32>
    %399 = arith.subf %374, %390 : vector<8x4xf32>
    %cst_89 = arith.constant 1.000000e+01 : f32
    %400 = vector.broadcast %cst_89 : f32 to vector<8x4xf32>
    %401 = arith.mulf %399, %400 : vector<8x4xf32>
    %402 = arith.negf %401 : vector<8x4xf32>
    %403 = math.exp %402 : vector<8x4xf32>
    %cst_90 = arith.constant 1.000000e+00 : f32
    %404 = vector.broadcast %cst_90 : f32 to vector<8x4xf32>
    %405 = arith.addf %404, %403 : vector<8x4xf32>
    %406 = arith.divf %404, %405 : vector<8x4xf32>
    %407 = arith.subf %398, %406 : vector<8x4xf32>
    %c0_91 = arith.constant 0 : index
    %c0_92 = arith.constant 0 : index
    %408 = vector.load %arg8[%c0_91, %c0_92] : memref<4x1xf32, #tpu.memory_space<vmem>>, vector<4x1xf32>
    %cst_93 = arith.constant dense<0.000000e+00> : vector<8x1xf32>
    %409 = tpu.matmul %407, %408, %cst_93 {dimension_numbers = #tpu.dot_dimension_numbers<[1], [0], [0], [1], [0, 0, 1, 1], [], []>} : vector<8x4xf32>, vector<4x1xf32>, vector<8x1xf32> -> vector<8x1xf32>
    %c0_94 = arith.constant 0 : index
    %410 = memref.load %arg9[%c0_94] : memref<1xf32, #tpu.memory_space<smem>>
    %411 = vector.broadcast %410 : f32 to vector<8x1xf32>
    %412 = arith.addf %409, %411 : vector<8x1xf32>
    %413 = math.tanh %412 : vector<8x1xf32>
    %c0_95 = arith.constant 0 : index
    %c0_96 = arith.constant 0 : index
    %414 = vector.load %arg10[%c0_95, %c0_96] : memref<8x1xf32, #tpu.memory_space<vmem>>, vector<8x1xf32>
    tpu.vector_store %arg10[%c0_95, %c0_96], %413 {strides = array<i32>} : memref<8x1xf32, #tpu.memory_space<vmem>>, vector<8x1xf32>,
    return
  }
}

</mosaic_0001>

<bundles_post_ra>
// kernel: tpu_custom_call.1
= control target key start
LH: loop header
LB: loop body
LE: loop exit
PB: predicated region body
PF: predicated region fallthrough
CT: control target
= control target key end

     0   :  { %vm118_vm0 = vcmask 1046528   ;;  %vm57_vm1 = vcmask 56320   ;;  %v1963_v9 = vmov 0.0   ;;  %s1964_s30 = smov 64   ;;  %s1965_s11 = smov 32   ;;  %vm224_vm6 = vcmask 261120   ;;  %s2403_s1 = inlined_call_operand.vmem [shape: f32[7,128], index: 1, kind: input, shape index: {}]   ;;  %s2404_s0 = inlined_call_operand.vmem [shape: f32[160,7], index: 0, kind: input, shape index: {}]   ;;  %s2405_s2 = inlined_call_operand.vmem [shape: f32[32,128], index: 2, kind: input, shape index: {}]   ;;  %s2406_s3 = inlined_call_operand.vmem [shape: f32[32,28], index: 3, kind: input, shape index: {}]   ;;  %s2407_s4 = inlined_call_operand.vmem [shape: f32[1,28], index: 4, kind: input, shape index: {}]   ;;  %s2408_s6 = inlined_call_operand.vmem [shape: f32[8,20], index: 6, kind: input, shape index: {}]   ;;  %s2409_s7 = inlined_call_operand.vmem [shape: f32[20,4], index: 7, kind: input, shape index: {}]   ;;  %s2410_s5 = inlined_call_operand.vmem [shape: f32[8,20], index: 5, kind: input, shape index: {}]   ;;  %s2411_s8 = inlined_call_operand.vmem [shape: f32[4,1], index: 8, kind: input, shape index: {}]   ;;  %s2412_s9 = inlined_call_operand.<no memory space> [shape: f32[1], index: 9, kind: input, shape index: {}]   ;;  %s2413_s10 = inlined_call_operand.vmem [shape: f32[8,1], index: 10, kind: output, shape index: {}]  }
   0x1   :  { %v56_v0 = vld [vmem:[%s2403_s1] sm:$0x7f]  ;;  %v47_v1 = vld [vmem:[%s2404_s0 + $0x58] sm:$0xff]  ;;  %v2041_v3 = vld [vmem:[%s2405_s2 + $0x10] sm:$0xff] }
   0x2   :  { %v2033_v2 = vld [vmem:[%s2405_s2 + $0x18] sm:$0xff]  ;;  %1775 = vmatpush.msk.msra.mxu1 %vm118_vm0, %v56_v0  ;;  %1706 = vmatpush.msk.msra.mxu0 %vm118_vm0, %v56_v0  ;;  %v36_v4 = vld [vmem:[%s2404_s0] sm:$0xff]  ;;  %v2052_v5 = vld [vmem:[%s2405_s2 + $0x8] sm:$0xff] }
   0x3   :  { %1718 = vmatmul.msk.f32.vlgmr.msra.gmra.mxu1 %vm57_vm1, %v47_v1  ;;  %1776 = vmatpush.msk.msra.mxu2 %vm118_vm0, %v56_v0  ;;  %v2061_v6 = vld [vmem:[%s2405_s2] sm:$0xff]  ;;  %v49_v8 = vld [vmem:[%s2404_s0 + $0x68] sm:$0xff]  ;;  %v50_v36 = vld [vmem:[%s2404_s0 + $0x70] sm:$0xff] }
   0x4   :  { %240 = vmatpush.msrb.mxu1 %v2033_v2  ;;  %1707 = vmatmul.msk.f32.vlgmr.msra.gmra.mxu0 %vm57_vm1, %v36_v4  ;;  %v48_v7 = vld [vmem:[%s2404_s0 + $0x60] sm:$0xff]  ;;  %v51_v37 = vld [vmem:[%s2404_s0 + $0x78] sm:$0xff]  ;;  %v37_v41 = vld [vmem:[%s2404_s0 + $0x8] sm:$0xff] }
   0x5   :  { %304 = vmatpush.msrb.mxu2 %v2033_v2  ;;  %1777 = vmatpush.msk.msra.mxu3 %vm118_vm0, %v56_v0  ;;  %v52_v38 = vld [vmem:[%s2404_s0 + $0x80] sm:$0xff] }
   0x6   :  { %241 = vmatpush.msrb.mxu1 %v2041_v3  ;;  %1721 = vmatmul.msk.f32.vlgmr.msra.gmra.mxu2 %vm57_vm1, %v50_v36 }
   0x7   :  { %368 = vmatpush.msrb.mxu3 %v2033_v2  ;;  %305 = vmatpush.msrb.mxu2 %v2041_v3 }
   0x8   :  { %242 = vmatpush.msrb.mxu1 %v2052_v5 }
   0x9   :  { %369 = vmatpush.msrb.mxu3 %v2041_v3  ;;  %306 = vmatpush.msrb.mxu2 %v2052_v5 }
   0xa   :  { %243 = vmatpush.msrb.mxu1 %v2061_v6 }
   0xb   :  { %370 = vmatpush.msrb.mxu3 %v2052_v5  ;;  %1719 = vmatmul.msk.f32.gmra.mxu1 %vm57_vm1, %v48_v7 }
   0xc   :  { %307 = vmatpush.msrb.mxu2 %v2061_v6  ;;  %432 = vmatpush.msra.mxu1 %v2033_v2 }
   0xd   :  { %371 = vmatpush.msrb.mxu3 %v2061_v6  ;;  %1708 = vmatmul.msk.f32.gmra.mxu0 %vm57_vm1, %v37_v41 }
   0xe   :  { %433 = vmatpush.msra.mxu1 %v2041_v3  ;;  %496 = vmatpush.msra.mxu2 %v2033_v2 }
   0xf   :  { %1722 = vmatmul.msk.f32.gmra.mxu2 %vm57_vm1, %v51_v37 }
  0x10   :  { %434 = vmatpush.msra.mxu1 %v2052_v5  ;;  %497 = vmatpush.msra.mxu2 %v2041_v3 }
  0x12   :  { %435 = vmatpush.msra.mxu1 %v2061_v6  ;;  %498 = vmatpush.msra.mxu2 %v2052_v5 }
  0x13   :  { %1720 = vmatmul.msk.f32.gmra.mxu1 %vm57_vm1, %v49_v8 }
  0x14   :  { %499 = vmatpush.msra.mxu2 %v2061_v6 }
  0x17   :  { %1723 = vmatmul.msk.f32.gmra.mxu2 %vm57_vm1, %v52_v38 }
  0x1b   :  { %244 = vmatmul.f32.vlgmr.msrb.gmra.mxu1 %v1963_v9  ;;  %v53_v9 = vld [vmem:[%s2404_s0 + $0x88] sm:$0xff] }
  0x1c   :  { %624 = vmatpush.msrb.mxu1 %v2033_v2  ;;  %1724 = vmatmul.msk.f32.vlgmr.msra.gmra.mxu3 %vm57_vm1, %v53_v9 }
  0x1d   :  { %560 = vmatpush.msra.mxu3 %v2033_v2 }
  0x1e   :  { %625 = vmatpush.msrb.mxu1 %v2041_v3 }
  0x1f   :  { %561 = vmatpush.msra.mxu3 %v2041_v3 }
  0x20   :  { %626 = vmatpush.msrb.mxu1 %v2052_v5 }
  0x21   :  { %562 = vmatpush.msra.mxu3 %v2052_v5 }
  0x22   :  { %627 = vmatpush.msrb.mxu1 %v2061_v6 }
  0x23   :  { %563 = vmatpush.msra.mxu3 %v2061_v6 }
  0x80   :  { %v2087_v10 = vpop.f32.mrf.mxu1 }
  0x81   :  { %v139_v13 = vpop.f32.mrf.mxu0 }
  0x88   :  { %v2089_v11 = vpop.f32.mrf.mxu1 }
  0x89   :  { %v2122_v43 = vpop.f32.mrf.mxu2 }
  0x8a   :  { %v142_v46 = vpop.f32.mrf.mxu0 }
  0x90   :  { %v2091_v12 = vpop.f32.mrf.mxu1 }
  0x92   :  { %v2124_v44 = vpop.f32.mrf.mxu2 }
  0x98   :  { %v245_v14 = vpop.f32.mrf.mxu1 }
  0x99   :  { %v248_v15 = vadd.f32 %v245_v14, %v139_v13  ;;  %v54_v13 = vld [vmem:[%s2404_s0 + $0x90] sm:$0xff]  ;;  %v55_v14 = vld [vmem:[%s2404_s0 + $0x98] sm:$0xff] }
  0x9a   :  { %v2126_v45 = vpop.f32.mrf.mxu2  ;;  %1725 = vmatmul.msk.f32.gmra.mxu3 %vm57_vm1, %v54_v13 }
  0x9b   :  { %1785 = vtanh.f32 %v248_v15  ;;  %v1727_v17 = vmul.f32 -1.442695, %v248_v15 }
  0x9d   :  { %1787 = vpow2.f32 %v1727_v17  ;;  %v38_v17 = vld [vmem:[%s2404_s0 + $0x10] sm:$0xff] }
  0x9e   :  { %1709 = vmatmul.msk.f32.gmra.mxu0 %vm57_vm1, %v38_v17 }
  0xa1   :  { %v1786_v16 = vpop.eup %1785 }
  0xa2   :  { %271 = vrot.lane.b32.xlu0 %v1786_v16, %s1964_s30  ;;  %1726 = vmatmul.msk.f32.gmra.mxu3 %vm57_vm1, %v55_v14 }
  0xa3   :  { %v1788_v18 = vpop.eup %1787 }
  0xa4   :  { %v252_v19 = vadd.f32 1.0, %v1788_v18 }
  0xa6   :  { %1789 = vrcp.f32 %v252_v19  ;;  %v264_v25 = vand.u32 2147483648, %v252_v19  ;;  %vm258_vm3 = vweird.f32 %v252_v19  ;;  %v262_v26 = vand.u32 2147483647, %v252_v19 }
  0xa8   :  { %v265_v28 = vor.u32 1.1754944e-38, %v264_v25  ;;  %vm263_vm5 = vcmp.eq.f32.partialorder %v262_v26, 8.507059e+37 }
  0xac   :  { %v1790_v20 = vpop.eup %1789 }
  0xad   :  { %v254_v21 = vmul.f32 %v1790_v20, %v252_v19  ;;  %vm259_vm2 = vweird.f32 %v1790_v20  ;;  %v2157_v19 = vpop.f32.mrf.mxu3 }
  0xae   :  { %vm260_vm4 = vmor %vm258_vm3, %vm259_vm2 }
  0xaf   :  { %v255_v22 = vsub.f32 1.0, %v254_v21 }
  0xb1   :  { %v256_v23 = vmul.f32 %v1790_v20, %v255_v22 }
  0xb3   :  { %v257_v24 = vadd.f32 %v1790_v20, %v256_v23 }
  0xb5   :  { %v261_v27 = vsel %vm260_vm4, %v1790_v20, %v257_v24 }
  0xb6   :  { %v266_v30 = vsel %vm263_vm5, %v265_v28, %v261_v27 }
  0xb7   :  { %v269_v32 = vmul.f32 0.0, %v266_v30 }
 0x114   :  { %v272_v29 = vpop.permute.xlu0 %271 }
 0x115   :  { %v274_v31 = vmul.f32 %v272_v29, %v266_v30 }
 0x117   :  { %276 = vrot.lane.b32.xlu0 %v274_v31, %s1965_s11 }
 0x11b   :  { %v145_v22 = vpop.f32.mrf.mxu0 }
 0x11d   :  { %v2159_v20 = vpop.f32.mrf.mxu3 }
 0x125   :  { %v2161_v21 = vpop.f32.mrf.mxu3 }
 0x189   :  { %v277_v33 = vpop.permute.xlu0 %276 }
 0x18a   :  { %v279_v34 = vadd.f32 %v277_v33, %v269_v32 }
 0x18c   :  { %1791 = vtanh.f32 %v279_v34 }
 0x192   :  { %v1792_v35 = vpop.eup %1791 }
 0x193   :  { %282 = vrot.lane.b32.xlu1 %v1792_v35, %s1964_s30 }
 0x205   :  { %v283_v39 = vpop.permute.xlu1 %282 }
 0x206   :  { %v285_v40 = vmul.f32 %v283_v39, %v266_v30 }
 0x208   :  { %288 = vrot.lane.b32.xlu1 %v285_v40, %s1965_s11 }
 0x27a   :  { %v289_v42 = vpop.permute.xlu1 %288 }
 0x27b   :  { %1728 = vmatmul.msk.f32.vlgmr.msrb.gmra.mxu2 %vm224_vm6, %v289_v42 }
 0x27c   :  { %688 = vmatpush.msrb.mxu2 %v2033_v2 }
 0x27e   :  { %689 = vmatpush.msrb.mxu2 %v2041_v3 }
 0x280   :  { %690 = vmatpush.msrb.mxu2 %v2052_v5 }
 0x282   :  { %691 = vmatpush.msrb.mxu2 %v2061_v6 }
 0x2fe   :  { %v309_v47 = vpop.f32.mrf.mxu2 }
 0x2ff   :  { %v312_v48 = vadd.f32 %v309_v47, %v142_v46 }
 0x301   :  { %1793 = vtanh.f32 %v312_v48  ;;  %v1729_v50 = vmul.f32 -1.442695, %v312_v48 }
 0x303   :  { %1795 = vpow2.f32 %v1729_v50  ;;  %v39_v50 = vld [vmem:[%s2404_s0 + $0x18] sm:$0xff] }
 0x304   :  { %1710 = vmatmul.msk.f32.gmra.mxu0 %vm57_vm1, %v39_v50 }
 0x307   :  { %v1794_v49 = vpop.eup %1793 }
 0x308   :  { %335 = vrot.lane.b32.xlu2 %v1794_v49, %s1964_s30 }
 0x309   :  { %v1796_v51 = vpop.eup %1795 }
 0x30a   :  { %v316_v52 = vadd.f32 1.0, %v1796_v51 }
 0x30c   :  { %1797 = vrcp.f32 %v316_v52  ;;  %v328_v58 = vand.u32 2147483648, %v316_v52  ;;  %vm322_vm8 = vweird.f32 %v316_v52  ;;  %v326_v59 = vand.u32 2147483647, %v316_v52 }
 0x30e   :  { %v329_v61 = vor.u32 1.1754944e-38, %v328_v58  ;;  %vm327_vm10 = vcmp.eq.f32.partialorder %v326_v59, 8.507059e+37 }
 0x312   :  { %v1798_v53 = vpop.eup %1797 }
 0x313   :  { %v318_v54 = vmul.f32 %v1798_v53, %v316_v52  ;;  %vm323_vm7 = vweird.f32 %v1798_v53 }
 0x314   :  { %vm324_vm9 = vmor %vm322_vm8, %vm323_vm7 }
 0x315   :  { %v319_v55 = vsub.f32 1.0, %v318_v54 }
 0x317   :  { %v320_v56 = vmul.f32 %v1798_v53, %v319_v55 }
 0x319   :  { %v321_v57 = vadd.f32 %v1798_v53, %v320_v56 }
 0x31b   :  { %v325_v60 = vsel %vm324_vm9, %v1798_v53, %v321_v57 }
 0x31c   :  { %v330_v63 = vsel %vm327_vm10, %v329_v61, %v325_v60 }
 0x31d   :  { %v333_v1 = vmul.f32 %v330_v63, %v279_v34 }
 0x362   :  { %v336_v62 = vpop.permute.xlu2 %335 }
 0x363   :  { %v338_v0 = vmul.f32 %v336_v62, %v330_v63 }
 0x365   :  { %340 = vrot.lane.b32.xlu2 %v338_v0, %s1965_s11 }
 0x381   :  { %v148_v52 = vpop.f32.mrf.mxu0 }
 0x3bf   :  { %v341_v4 = vpop.permute.xlu2 %340 }
 0x3c0   :  { %v343_v7 = vadd.f32 %v341_v4, %v333_v1 }
 0x3c2   :  { %1799 = vtanh.f32 %v343_v7 }
 0x3c8   :  { %v1800_v8 = vpop.eup %1799 }
 0x3c9   :  { %346 = vrot.lane.b32.xlu0 %v1800_v8, %s1964_s30 }
 0x43b   :  { %v347_v15 = vpop.permute.xlu0 %346 }
 0x43c   :  { %v349_v16 = vmul.f32 %v347_v15, %v330_v63 }
 0x43e   :  { %352 = vrot.lane.b32.xlu1 %v349_v16, %s1965_s11 }
 0x4b0   :  { %v353_v18 = vpop.permute.xlu1 %352 }
 0x4b1   :  { %1730 = vmatmul.msk.f32.vlgmr.msrb.gmra.mxu3 %vm224_vm6, %v353_v18 }
 0x4b2   :  { %752 = vmatpush.msrb.mxu3 %v2033_v2 }
 0x4b4   :  { %753 = vmatpush.msrb.mxu3 %v2041_v3 }
 0x4b6   :  { %754 = vmatpush.msrb.mxu3 %v2052_v5 }
 0x4b8   :  { %755 = vmatpush.msrb.mxu3 %v2061_v6 }
 0x534   :  { %v373_v23 = vpop.f32.mrf.mxu3 }
 0x535   :  { %v376_v24 = vadd.f32 %v373_v23, %v145_v22  ;;  %v40_v23 = vld [vmem:[%s2404_s0 + $0x20] sm:$0xff] }
 0x536   :  { %1711 = vmatmul.msk.f32.gmra.mxu0 %vm57_vm1, %v40_v23 }
 0x537   :  { %1801 = vtanh.f32 %v376_v24  ;;  %v1731_v26 = vmul.f32 -1.442695, %v376_v24 }
 0x539   :  { %1803 = vpow2.f32 %v1731_v26 }
 0x53d   :  { %v1802_v25 = vpop.eup %1801 }
 0x53e   :  { %399 = vrot.lane.b32.xlu2 %v1802_v25, %s1964_s30 }
 0x53f   :  { %v1804_v27 = vpop.eup %1803 }
 0x540   :  { %v380_v28 = vadd.f32 1.0, %v1804_v27 }
 0x542   :  { %1805 = vrcp.f32 %v380_v28  ;;  %v392_v34 = vand.u32 2147483648, %v380_v28  ;;  %vm386_vm12 = vweird.f32 %v380_v28  ;;  %v390_v35 = vand.u32 2147483647, %v380_v28 }
 0x544   :  { %v393_v37 = vor.u32 1.1754944e-38, %v392_v34  ;;  %vm391_vm14 = vcmp.eq.f32.partialorder %v390_v35, 8.507059e+37 }
 0x548   :  { %v1806_v29 = vpop.eup %1805 }
 0x549   :  { %v382_v30 = vmul.f32 %v1806_v29, %v380_v28  ;;  %vm387_vm11 = vweird.f32 %v1806_v29 }
 0x54a   :  { %vm388_vm13 = vmor %vm386_vm12, %vm387_vm11 }
 0x54b   :  { %v383_v31 = vsub.f32 1.0, %v382_v30 }
 0x54d   :  { %v384_v32 = vmul.f32 %v1806_v29, %v383_v31 }
 0x54f   :  { %v385_v33 = vadd.f32 %v1806_v29, %v384_v32 }
 0x551   :  { %v389_v36 = vsel %vm388_vm13, %v1806_v29, %v385_v33 }
 0x552   :  { %v394_v39 = vsel %vm391_vm14, %v393_v37, %v389_v36 }
 0x553   :  { %v397_v41 = vmul.f32 %v394_v39, %v343_v7 }
 0x598   :  { %v400_v38 = vpop.permute.xlu2 %399 }
 0x599   :  { %v402_v40 = vmul.f32 %v400_v38, %v394_v39 }
 0x59b   :  { %404 = vrot.lane.b32.xlu0 %v402_v40, %s1965_s11 }
 0x5b3   :  { %v151_v25 = vpop.f32.mrf.mxu0 }
 0x60d   :  { %v405_v42 = vpop.permute.xlu0 %404 }
 0x60e   :  { %v407_v46 = vadd.f32 %v405_v42, %v397_v41 }
 0x610   :  { %1807 = vtanh.f32 %v407_v46 }
 0x616   :  { %v1808_v47 = vpop.eup %1807 }
 0x617   :  { %410 = vrot.lane.b32.xlu1 %v1808_v47, %s1964_s30 }
 0x689   :  { %v411_v48 = vpop.permute.xlu1 %410 }
 0x68a   :  { %v413_v49 = vmul.f32 %v411_v48, %v394_v39 }
 0x68c   :  { %416 = vrot.lane.b32.xlu2 %v413_v49, %s1965_s11 }
 0x6e6   :  { %v417_v51 = vpop.permute.xlu2 %416 }
 0x6e7   :  { %1732 = vmatmul.msk.f32.vlgmr.msra.gmra.mxu1 %vm224_vm6, %v417_v51 }
 0x6e8   :  { %816 = vmatpush.msra.mxu1 %v2033_v2 }
 0x6ea   :  { %817 = vmatpush.msra.mxu1 %v2041_v3 }
 0x6ec   :  { %818 = vmatpush.msra.mxu1 %v2052_v5 }
 0x6ee   :  { %819 = vmatpush.msra.mxu1 %v2061_v6 }
 0x764   :  { %v437_v53 = vpop.f32.mrf.mxu1 }
 0x765   :  { %v440_v54 = vadd.f32 %v437_v53, %v148_v52  ;;  %v41_v53 = vld [vmem:[%s2404_s0 + $0x28] sm:$0xff] }
 0x766   :  { %1712 = vmatmul.msk.f32.gmra.mxu0 %vm57_vm1, %v41_v53 }
 0x767   :  { %1809 = vtanh.f32 %v440_v54  ;;  %v1733_v56 = vmul.f32 -1.442695, %v440_v54 }
 0x769   :  { %1811 = vpow2.f32 %v1733_v56 }
 0x76d   :  { %v1810_v55 = vpop.eup %1809 }
 0x76e   :  { %463 = vrot.lane.b32.xlu0 %v1810_v55, %s1964_s30 }
 0x76f   :  { %v1812_v57 = vpop.eup %1811 }
 0x770   :  { %v444_v58 = vadd.f32 1.0, %v1812_v57 }
 0x772   :  { %1813 = vrcp.f32 %v444_v58  ;;  %v456_v0 = vand.u32 2147483648, %v444_v58  ;;  %vm450_vm0 = vweird.f32 %v444_v58  ;;  %v454_v1 = vand.u32 2147483647, %v444_v58 }
 0x774   :  { %v457_v7 = vor.u32 1.1754944e-38, %v456_v0  ;;  %vm455_vm3 = vcmp.eq.f32.partialorder %v454_v1, 8.507059e+37 }
 0x778   :  { %v1814_v59 = vpop.eup %1813 }
 0x779   :  { %v446_v60 = vmul.f32 %v1814_v59, %v444_v58  ;;  %vm451_vm15 = vweird.f32 %v1814_v59 }
 0x77a   :  { %vm452_vm2 = vmor %vm450_vm0, %vm451_vm15 }
 0x77b   :  { %v447_v61 = vsub.f32 1.0, %v446_v60 }
 0x77d   :  { %v448_v62 = vmul.f32 %v1814_v59, %v447_v61 }
 0x77f   :  { %v449_v63 = vadd.f32 %v1814_v59, %v448_v62 }
 0x781   :  { %v453_v4 = vsel %vm452_vm2, %v1814_v59, %v449_v63 }
 0x782   :  { %v458_v9 = vsel %vm455_vm3, %v457_v7, %v453_v4 }
 0x783   :  { %v461_v14 = vmul.f32 %v458_v9, %v407_v46 }
 0x7e0   :  { %v464_v8 = vpop.permute.xlu0 %463 }
 0x7e1   :  { %v466_v13 = vmul.f32 %v464_v8, %v458_v9 }
 0x7e3   :  { %468 = vrot.lane.b32.xlu1 %v466_v13, %s1965_s11  ;;  %v154_v55 = vpop.f32.mrf.mxu0 }
 0x855   :  { %v469_v15 = vpop.permute.xlu1 %468 }
 0x856   :  { %v471_v16 = vadd.f32 %v469_v15, %v461_v14 }
 0x858   :  { %1815 = vtanh.f32 %v471_v16 }
 0x85e   :  { %v1816_v17 = vpop.eup %1815 }
 0x85f   :  { %474 = vrot.lane.b32.xlu2 %v1816_v17, %s1964_s30 }
 0x8b9   :  { %v475_v18 = vpop.permute.xlu2 %474 }
 0x8ba   :  { %v477_v22 = vmul.f32 %v475_v18, %v458_v9 }
 0x8bc   :  { %480 = vrot.lane.b32.xlu0 %v477_v22, %s1965_s11 }
 0x92e   :  { %v481_v24 = vpop.permute.xlu0 %480 }
 0x92f   :  { %1734 = vmatmul.msk.f32.vlgmr.msra.gmra.mxu2 %vm224_vm6, %v481_v24 }
 0x930   :  { %880 = vmatpush.msra.mxu2 %v2033_v2 }
 0x932   :  { %881 = vmatpush.msra.mxu2 %v2041_v3 }
 0x934   :  { %882 = vmatpush.msra.mxu2 %v2052_v5 }
 0x936   :  { %883 = vmatpush.msra.mxu2 %v2061_v6 }
 0x9b2   :  { %v501_v26 = vpop.f32.mrf.mxu2 }
 0x9b3   :  { %v504_v27 = vadd.f32 %v501_v26, %v151_v25  ;;  %v42_v26 = vld [vmem:[%s2404_s0 + $0x30] sm:$0xff] }
 0x9b4   :  { %1713 = vmatmul.msk.f32.gmra.mxu0 %vm57_vm1, %v42_v26 }
 0x9b5   :  { %1817 = vtanh.f32 %v504_v27  ;;  %v1735_v29 = vmul.f32 -1.442695, %v504_v27 }
 0x9b7   :  { %1819 = vpow2.f32 %v1735_v29 }
 0x9bb   :  { %v1818_v28 = vpop.eup %1817 }
 0x9bc   :  { %527 = vrot.lane.b32.xlu1 %v1818_v28, %s1964_s30 }
 0x9bd   :  { %v1820_v30 = vpop.eup %1819 }
 0x9be   :  { %v508_v31 = vadd.f32 1.0, %v1820_v30 }
 0x9c0   :  { %1821 = vrcp.f32 %v508_v31  ;;  %v520_v37 = vand.u32 2147483648, %v508_v31  ;;  %vm514_vm5 = vweird.f32 %v508_v31  ;;  %v518_v38 = vand.u32 2147483647, %v508_v31 }
 0x9c2   :  { %v521_v40 = vor.u32 1.1754944e-38, %v520_v37  ;;  %vm519_vm8 = vcmp.eq.f32.partialorder %v518_v38, 8.507059e+37 }
 0x9c6   :  { %v1822_v32 = vpop.eup %1821 }
 0x9c7   :  { %v510_v33 = vmul.f32 %v1822_v32, %v508_v31  ;;  %vm515_vm4 = vweird.f32 %v1822_v32 }
 0x9c8   :  { %vm516_vm7 = vmor %vm514_vm5, %vm515_vm4 }
 0x9c9   :  { %v511_v34 = vsub.f32 1.0, %v510_v33 }
 0x9cb   :  { %v512_v35 = vmul.f32 %v1822_v32, %v511_v34 }
 0x9cd   :  { %v513_v36 = vadd.f32 %v1822_v32, %v512_v35 }
 0x9cf   :  { %v517_v39 = vsel %vm516_vm7, %v1822_v32, %v513_v36 }
 0x9d0   :  { %v522_v42 = vsel %vm519_vm8, %v521_v40, %v517_v39 }
 0x9d1   :  { %v525_v47 = vmul.f32 %v522_v42, %v471_v16 }
 0xa2e   :  { %v528_v41 = vpop.permute.xlu1 %527 }
 0xa2f   :  { %v530_v46 = vmul.f32 %v528_v41, %v522_v42 }
 0xa31   :  { %532 = vrot.lane.b32.xlu2 %v530_v46, %s1965_s11  ;;  %v157_v28 = vpop.f32.mrf.mxu0 }
 0xa8b   :  { %v533_v48 = vpop.permute.xlu2 %532 }
 0xa8c   :  { %v535_v49 = vadd.f32 %v533_v48, %v525_v47 }
 0xa8e   :  { %1823 = vtanh.f32 %v535_v49 }
 0xa94   :  { %v1824_v50 = vpop.eup %1823 }
 0xa95   :  { %538 = vrot.lane.b32.xlu0 %v1824_v50, %s1964_s30 }
 0xb07   :  { %v539_v51 = vpop.permute.xlu0 %538 }
 0xb08   :  { %v541_v52 = vmul.f32 %v539_v51, %v522_v42 }
 0xb0a   :  { %544 = vrot.lane.b32.xlu1 %v541_v52, %s1965_s11 }
 0xb7c   :  { %v545_v54 = vpop.permute.xlu1 %544 }
 0xb7d   :  { %1736 = vmatmul.msk.f32.vlgmr.msra.gmra.mxu3 %vm224_vm6, %v545_v54 }
 0xb7e   :  { %944 = vmatpush.msra.mxu3 %v2033_v2 }
 0xb80   :  { %945 = vmatpush.msra.mxu3 %v2041_v3 }
 0xb82   :  { %946 = vmatpush.msra.mxu3 %v2052_v5 }
 0xb84   :  { %947 = vmatpush.msra.mxu3 %v2061_v6 }
 0xc00   :  { %v565_v56 = vpop.f32.mrf.mxu3 }
 0xc01   :  { %v568_v57 = vadd.f32 %v565_v56, %v154_v55  ;;  %v43_v56 = vld [vmem:[%s2404_s0 + $0x38] sm:$0xff] }
 0xc02   :  { %1714 = vmatmul.msk.f32.gmra.mxu0 %vm57_vm1, %v43_v56 }
 0xc03   :  { %1825 = vtanh.f32 %v568_v57  ;;  %v1737_v59 = vmul.f32 -1.442695, %v568_v57 }
 0xc05   :  { %1827 = vpow2.f32 %v1737_v59 }
 0xc09   :  { %v1826_v58 = vpop.eup %1825 }
 0xc0a   :  { %591 = vrot.lane.b32.xlu2 %v1826_v58, %s1964_s30 }
 0xc0b   :  { %v1828_v60 = vpop.eup %1827 }
 0xc0c   :  { %v572_v61 = vadd.f32 1.0, %v1828_v60 }
 0xc0e   :  { %1829 = vrcp.f32 %v572_v61  ;;  %v584_v7 = vand.u32 2147483648, %v572_v61  ;;  %vm578_vm10 = vweird.f32 %v572_v61  ;;  %v582_v8 = vand.u32 2147483647, %v572_v61 }
 0xc10   :  { %v585_v13 = vor.u32 1.1754944e-38, %v584_v7  ;;  %vm583_vm12 = vcmp.eq.f32.partialorder %v582_v8, 8.507059e+37 }
 0xc14   :  { %v1830_v62 = vpop.eup %1829 }
 0xc15   :  { %v574_v63 = vmul.f32 %v1830_v62, %v572_v61  ;;  %vm579_vm9 = vweird.f32 %v1830_v62 }
 0xc16   :  { %vm580_vm11 = vmor %vm578_vm10, %vm579_vm9 }
 0xc17   :  { %v575_v0 = vsub.f32 1.0, %v574_v63 }
 0xc19   :  { %v576_v1 = vmul.f32 %v1830_v62, %v575_v0 }
 0xc1b   :  { %v577_v4 = vadd.f32 %v1830_v62, %v576_v1 }
 0xc1d   :  { %v581_v9 = vsel %vm580_vm11, %v1830_v62, %v577_v4 }
 0xc1e   :  { %v586_v15 = vsel %vm583_vm12, %v585_v13, %v581_v9 }
 0xc1f   :  { %v589_v17 = vmul.f32 %v586_v15, %v535_v49 }
 0xc64   :  { %v592_v14 = vpop.permute.xlu2 %591 }
 0xc65   :  { %v594_v16 = vmul.f32 %v592_v14, %v586_v15 }
 0xc67   :  { %596 = vrot.lane.b32.xlu0 %v594_v16, %s1965_s11 }
 0xc7f   :  { %v160_v58 = vpop.f32.mrf.mxu0 }
 0xcd9   :  { %v597_v18 = vpop.permute.xlu0 %596 }
 0xcda   :  { %v599_v22 = vadd.f32 %v597_v18, %v589_v17 }
 0xcdc   :  { %1831 = vtanh.f32 %v599_v22 }
 0xce2   :  { %v1832_v23 = vpop.eup %1831 }
 0xce3   :  { %602 = vrot.lane.b32.xlu1 %v1832_v23, %s1964_s30 }
 0xd55   :  { %v603_v24 = vpop.permute.xlu1 %602 }
 0xd56   :  { %v605_v25 = vmul.f32 %v603_v24, %v586_v15 }
 0xd58   :  { %608 = vrot.lane.b32.xlu2 %v605_v25, %s1965_s11 }
 0xdb2   :  { %v609_v27 = vpop.permute.xlu2 %608 }
 0xdb3   :  { %1738 = vmatmul.msk.f32.vlgmr.msrb.gmra.mxu1 %vm224_vm6, %v609_v27 }
 0xdb4   :  { %1008 = vmatpush.msrb.mxu1 %v2033_v2 }
 0xdb6   :  { %1009 = vmatpush.msrb.mxu1 %v2041_v3 }
 0xdb8   :  { %1010 = vmatpush.msrb.mxu1 %v2052_v5 }
 0xdba   :  { %1011 = vmatpush.msrb.mxu1 %v2061_v6 }
 0xe30   :  { %v629_v29 = vpop.f32.mrf.mxu1 }
 0xe31   :  { %v632_v30 = vadd.f32 %v629_v29, %v157_v28  ;;  %v44_v29 = vld [vmem:[%s2404_s0 + $0x40] sm:$0xff] }
 0xe32   :  { %1715 = vmatmul.msk.f32.gmra.mxu0 %vm57_vm1, %v44_v29 }
 0xe33   :  { %1833 = vtanh.f32 %v632_v30  ;;  %v1739_v32 = vmul.f32 -1.442695, %v632_v30 }
 0xe35   :  { %1835 = vpow2.f32 %v1739_v32 }
 0xe39   :  { %v1834_v31 = vpop.eup %1833 }
 0xe3a   :  { %655 = vrot.lane.b32.xlu0 %v1834_v31, %s1964_s30 }
 0xe3b   :  { %v1836_v33 = vpop.eup %1835 }
 0xe3c   :  { %v636_v34 = vadd.f32 1.0, %v1836_v33 }
 0xe3e   :  { %1837 = vrcp.f32 %v636_v34  ;;  %v648_v40 = vand.u32 2147483648, %v636_v34  ;;  %vm642_vm14 = vweird.f32 %v636_v34  ;;  %v646_v41 = vand.u32 2147483647, %v636_v34 }
 0xe40   :  { %v649_v46 = vor.u32 1.1754944e-38, %v648_v40  ;;  %vm647_vm0 = vcmp.eq.f32.partialorder %v646_v41, 8.507059e+37 }
 0xe44   :  { %v1838_v35 = vpop.eup %1837 }
 0xe45   :  { %v638_v36 = vmul.f32 %v1838_v35, %v636_v34  ;;  %vm643_vm13 = vweird.f32 %v1838_v35 }
 0xe46   :  { %vm644_vm15 = vmor %vm642_vm14, %vm643_vm13 }
 0xe47   :  { %v639_v37 = vsub.f32 1.0, %v638_v36 }
 0xe49   :  { %v640_v38 = vmul.f32 %v1838_v35, %v639_v37 }
 0xe4b   :  { %v641_v39 = vadd.f32 %v1838_v35, %v640_v38 }
 0xe4d   :  { %v645_v42 = vsel %vm644_vm15, %v1838_v35, %v641_v39 }
 0xe4e   :  { %v650_v48 = vsel %vm647_vm0, %v649_v46, %v645_v42 }
 0xe4f   :  { %v653_v50 = vmul.f32 %v650_v48, %v599_v22 }
 0xeac   :  { %v656_v47 = vpop.permute.xlu0 %655 }
 0xead   :  { %v658_v49 = vmul.f32 %v656_v47, %v650_v48 }
 0xeaf   :  { %660 = vrot.lane.b32.xlu1 %v658_v49, %s1965_s11  ;;  %v163_v31 = vpop.f32.mrf.mxu0 }
 0xf21   :  { %v661_v51 = vpop.permute.xlu1 %660 }
 0xf22   :  { %v663_v52 = vadd.f32 %v661_v51, %v653_v50 }
 0xf24   :  { %1839 = vtanh.f32 %v663_v52 }
 0xf2a   :  { %v1840_v53 = vpop.eup %1839 }
 0xf2b   :  { %666 = vrot.lane.b32.xlu2 %v1840_v53, %s1964_s30 }
 0xf85   :  { %v667_v54 = vpop.permute.xlu2 %666 }
 0xf86   :  { %v669_v55 = vmul.f32 %v667_v54, %v650_v48 }
 0xf88   :  { %672 = vrot.lane.b32.xlu0 %v669_v55, %s1965_s11 }
 0xffa   :  { %v673_v57 = vpop.permute.xlu0 %672 }
 0xffb   :  { %1740 = vmatmul.msk.f32.vlgmr.msrb.gmra.mxu2 %vm224_vm6, %v673_v57 }
 0xffc   :  { %1072 = vmatpush.msrb.mxu2 %v2033_v2 }
 0xffe   :  { %1073 = vmatpush.msrb.mxu2 %v2041_v3 }
0x1000   :  { %1074 = vmatpush.msrb.mxu2 %v2052_v5 }
0x1002   :  { %1075 = vmatpush.msrb.mxu2 %v2061_v6 }
0x107e   :  { %v693_v59 = vpop.f32.mrf.mxu2 }
0x107f   :  { %v696_v60 = vadd.f32 %v693_v59, %v160_v58  ;;  %v45_v59 = vld [vmem:[%s2404_s0 + $0x48] sm:$0xff] }
0x1080   :  { %1716 = vmatmul.msk.f32.gmra.mxu0 %vm57_vm1, %v45_v59 }
0x1081   :  { %1841 = vtanh.f32 %v696_v60  ;;  %v1741_v62 = vmul.f32 -1.442695, %v696_v60 }
0x1083   :  { %1843 = vpow2.f32 %v1741_v62 }
0x1087   :  { %v1842_v61 = vpop.eup %1841 }
0x1088   :  { %719 = vrot.lane.b32.xlu1 %v1842_v61, %s1964_s30 }
0x1089   :  { %v1844_v63 = vpop.eup %1843 }
0x108a   :  { %v700_v0 = vadd.f32 1.0, %v1844_v63 }
0x108c   :  { %1845 = vrcp.f32 %v700_v0  ;;  %v712_v13 = vand.u32 2147483648, %v700_v0  ;;  %vm706_vm3 = vweird.f32 %v700_v0  ;;  %v710_v14 = vand.u32 2147483647, %v700_v0 }
0x108e   :  { %v713_v16 = vor.u32 1.1754944e-38, %v712_v13  ;;  %vm711_vm5 = vcmp.eq.f32.partialorder %v710_v14, 8.507059e+37 }
0x1092   :  { %v1846_v1 = vpop.eup %1845 }
0x1093   :  { %v702_v4 = vmul.f32 %v1846_v1, %v700_v0  ;;  %vm707_vm2 = vweird.f32 %v1846_v1 }
0x1094   :  { %vm708_vm4 = vmor %vm706_vm3, %vm707_vm2 }
0x1095   :  { %v703_v7 = vsub.f32 1.0, %v702_v4 }
0x1097   :  { %v704_v8 = vmul.f32 %v1846_v1, %v703_v7 }
0x1099   :  { %v705_v9 = vadd.f32 %v1846_v1, %v704_v8 }
0x109b   :  { %v709_v15 = vsel %vm708_vm4, %v1846_v1, %v705_v9 }
0x109c   :  { %v714_v18 = vsel %vm711_vm5, %v713_v16, %v709_v15 }
0x109d   :  { %v717_v23 = vmul.f32 %v714_v18, %v663_v52 }
0x10fa   :  { %v720_v17 = vpop.permute.xlu1 %719 }
0x10fb   :  { %v722_v22 = vmul.f32 %v720_v17, %v714_v18 }
0x10fd   :  { %724 = vrot.lane.b32.xlu2 %v722_v22, %s1965_s11  ;;  %v166_v61 = vpop.f32.mrf.mxu0 }
0x1157   :  { %v725_v24 = vpop.permute.xlu2 %724 }
0x1158   :  { %v727_v25 = vadd.f32 %v725_v24, %v717_v23 }
0x115a   :  { %1847 = vtanh.f32 %v727_v25 }
0x1160   :  { %v1848_v26 = vpop.eup %1847 }
0x1161   :  { %730 = vrot.lane.b32.xlu0 %v1848_v26, %s1964_s30 }
0x11d3   :  { %v731_v27 = vpop.permute.xlu0 %730 }
0x11d4   :  { %v733_v28 = vmul.f32 %v731_v27, %v714_v18 }
0x11d6   :  { %736 = vrot.lane.b32.xlu1 %v733_v28, %s1965_s11 }
0x1248   :  { %v737_v30 = vpop.permute.xlu1 %736 }
0x1249   :  { %1742 = vmatmul.msk.f32.vlgmr.msrb.gmra.mxu3 %vm224_vm6, %v737_v30  ;;  %v46_v30 = vld [vmem:[%s2404_s0 + $0x50] sm:$0xff] }
0x124a   :  { %1136 = vmatpush.msrb.mxu3 %v2033_v2  ;;  %1717 = vmatmul.msk.f32.gmra.mxu0 %vm57_vm1, %v46_v30 }
0x124c   :  { %1137 = vmatpush.msrb.mxu3 %v2041_v3 }
0x124e   :  { %1138 = vmatpush.msrb.mxu3 %v2052_v5 }
0x1250   :  { %1139 = vmatpush.msrb.mxu3 %v2061_v6 }
0x12cc   :  { %v757_v32 = vpop.f32.mrf.mxu3 }
0x12cd   :  { %v760_v33 = vadd.f32 %v757_v32, %v163_v31  ;;  %v2266_v32 = vld [vmem:[%s2405_s2 + $0x18] sm:$0xff] }
0x12cf   :  { %1849 = vtanh.f32 %v760_v33  ;;  %v1743_v35 = vmul.f32 -1.442695, %v760_v33  ;;  %v2272_v33 = vld [vmem:[%s2405_s2 + $0x10] sm:$0xff] }
0x12d1   :  { %1851 = vpow2.f32 %v1743_v35 }
0x12d5   :  { %v1850_v34 = vpop.eup %1849 }
0x12d6   :  { %783 = vrot.lane.b32.xlu2 %v1850_v34, %s1964_s30  ;;  %v169_v34 = vpop.f32.mrf.mxu0 }
0x12d7   :  { %v1852_v36 = vpop.eup %1851 }
0x12d8   :  { %v764_v37 = vadd.f32 1.0, %v1852_v36 }
0x12da   :  { %1853 = vrcp.f32 %v764_v37  ;;  %v776_v46 = vand.u32 2147483648, %v764_v37  ;;  %vm770_vm8 = vweird.f32 %v764_v37  ;;  %v774_v47 = vand.u32 2147483647, %v764_v37 }
0x12dc   :  { %v777_v49 = vor.u32 1.1754944e-38, %v776_v46  ;;  %vm775_vm10 = vcmp.eq.f32.partialorder %v774_v47, 8.507059e+37 }
0x12e0   :  { %v1854_v38 = vpop.eup %1853 }
0x12e1   :  { %v766_v39 = vmul.f32 %v1854_v38, %v764_v37  ;;  %vm771_vm7 = vweird.f32 %v1854_v38 }
0x12e2   :  { %vm772_vm9 = vmor %vm770_vm8, %vm771_vm7 }
0x12e3   :  { %v767_v40 = vsub.f32 1.0, %v766_v39 }
0x12e5   :  { %v768_v41 = vmul.f32 %v1854_v38, %v767_v40 }
0x12e7   :  { %v769_v42 = vadd.f32 %v1854_v38, %v768_v41 }
0x12e9   :  { %v773_v48 = vsel %vm772_vm9, %v1854_v38, %v769_v42 }
0x12ea   :  { %v778_v51 = vsel %vm775_vm10, %v777_v49, %v773_v48 }
0x12eb   :  { %v781_v53 = vmul.f32 %v778_v51, %v727_v25 }
0x1330   :  { %v784_v50 = vpop.permute.xlu2 %783 }
0x1331   :  { %v786_v52 = vmul.f32 %v784_v50, %v778_v51 }
0x1333   :  { %788 = vrot.lane.b32.xlu0 %v786_v52, %s1965_s11 }
0x13a5   :  { %v789_v54 = vpop.permute.xlu0 %788 }
0x13a6   :  { %v791_v55 = vadd.f32 %v789_v54, %v781_v53 }
0x13a8   :  { %1855 = vtanh.f32 %v791_v55 }
0x13ae   :  { %v1856_v56 = vpop.eup %1855 }
0x13af   :  { %794 = vrot.lane.b32.xlu1 %v1856_v56, %s1964_s30 }
0x1421   :  { %v795_v57 = vpop.permute.xlu1 %794 }
0x1422   :  { %v797_v58 = vmul.f32 %v795_v57, %v778_v51 }
0x1424   :  { %800 = vrot.lane.b32.xlu2 %v797_v58, %s1965_s11 }
0x147e   :  { %v801_v60 = vpop.permute.xlu2 %800 }
0x147f   :  { %1744 = vmatmul.msk.f32.vlgmr.msra.gmra.mxu1 %vm224_vm6, %v801_v60 }
0x1480   :  { %1200 = vmatpush.msra.mxu1 %v2033_v2 }
0x1482   :  { %1201 = vmatpush.msra.mxu1 %v2041_v3 }
0x1484   :  { %1202 = vmatpush.msra.mxu1 %v2052_v5 }
0x1486   :  { %1203 = vmatpush.msra.mxu1 %v2061_v6 }
0x14fc   :  { %v821_v62 = vpop.f32.mrf.mxu1 }
0x14fd   :  { %v824_v63 = vadd.f32 %v821_v62, %v166_v61  ;;  %v2287_v61 = vld [vmem:[%s2405_s2 + $0x8] sm:$0xff]  ;;  %v2293_v62 = vld [vmem:[%s2405_s2] sm:$0xff] }
0x14ff   :  { %1857 = vtanh.f32 %v824_v63  ;;  %v1745_v1 = vmul.f32 -1.442695, %v824_v63 }
0x1501   :  { %1859 = vpow2.f32 %v1745_v1 }
0x1505   :  { %v1858_v0 = vpop.eup %1857 }
0x1506   :  { %847 = vrot.lane.b32.xlu0 %v1858_v0, %s1964_s30 }
0x1507   :  { %v1860_v4 = vpop.eup %1859 }
0x1508   :  { %v828_v7 = vadd.f32 1.0, %v1860_v4 }
0x150a   :  { %1861 = vrcp.f32 %v828_v7  ;;  %v840_v14 = vand.u32 2147483648, %v828_v7  ;;  %vm834_vm12 = vweird.f32 %v828_v7  ;;  %v838_v15 = vand.u32 2147483647, %v828_v7 }
0x150c   :  { %v841_v17 = vor.u32 1.1754944e-38, %v840_v14  ;;  %vm839_vm14 = vcmp.eq.f32.partialorder %v838_v15, 8.507059e+37 }
0x1510   :  { %v1862_v8 = vpop.eup %1861 }
0x1511   :  { %v830_v2 = vmul.f32 %v1862_v8, %v828_v7  ;;  %vm835_vm11 = vweird.f32 %v1862_v8 }
0x1512   :  { %vm836_vm13 = vmor %vm834_vm12, %vm835_vm11 }
0x1513   :  { %v831_v9 = vsub.f32 1.0, %v830_v2 }
0x1515   :  { %v832_v3 = vmul.f32 %v1862_v8, %v831_v9 }
0x1517   :  { %v833_v13 = vadd.f32 %v1862_v8, %v832_v3 }
0x1519   :  { %v837_v16 = vsel %vm836_vm13, %v1862_v8, %v833_v13 }
0x151a   :  { %v842_v22 = vsel %vm839_vm14, %v841_v17, %v837_v16 }
0x151b   :  { %v845_v24 = vmul.f32 %v842_v22, %v791_v55 }
0x1578   :  { %v848_v18 = vpop.permute.xlu0 %847 }
0x1579   :  { %v850_v23 = vmul.f32 %v848_v18, %v842_v22 }
0x157b   :  { %852 = vrot.lane.b32.xlu1 %v850_v23, %s1965_s11 }
0x15ed   :  { %v853_v25 = vpop.permute.xlu1 %852 }
0x15ee   :  { %v855_v26 = vadd.f32 %v853_v25, %v845_v24 }
0x15f0   :  { %1863 = vtanh.f32 %v855_v26 }
0x15f6   :  { %v1864_v27 = vpop.eup %1863 }
0x15f7   :  { %858 = vrot.lane.b32.xlu2 %v1864_v27, %s1964_s30 }
0x1651   :  { %v859_v28 = vpop.permute.xlu2 %858 }
0x1652   :  { %v861_v29 = vmul.f32 %v859_v28, %v842_v22 }
0x1654   :  { %864 = vrot.lane.b32.xlu0 %v861_v29, %s1965_s11 }
0x16c6   :  { %v865_v31 = vpop.permute.xlu0 %864 }
0x16c7   :  { %1746 = vmatmul.msk.f32.vlgmr.msra.gmra.mxu2 %vm224_vm6, %v865_v31 }
0x16c8   :  { %1264 = vmatpush.msra.mxu2 %v2266_v32 }
0x16ca   :  { %1265 = vmatpush.msra.mxu2 %v2272_v33 }
0x16cc   :  { %1266 = vmatpush.msra.mxu2 %v2052_v5 }
0x16ce   :  { %1267 = vmatpush.msra.mxu2 %v2061_v6 }
0x174a   :  { %v885_v35 = vpop.f32.mrf.mxu2 }
0x174b   :  { %v888_v36 = vadd.f32 %v885_v35, %v169_v34 }
0x174d   :  { %1865 = vtanh.f32 %v888_v36  ;;  %v1747_v38 = vmul.f32 -1.442695, %v888_v36 }
0x174f   :  { %1867 = vpow2.f32 %v1747_v38 }
0x1753   :  { %v1866_v37 = vpop.eup %1865 }
0x1754   :  { %911 = vrot.lane.b32.xlu1 %v1866_v37, %s1964_s30 }
0x1755   :  { %v1868_v39 = vpop.eup %1867 }
0x1756   :  { %v892_v40 = vadd.f32 1.0, %v1868_v39 }
0x1758   :  { %1869 = vrcp.f32 %v892_v40  ;;  %v904_v5 = vand.u32 2147483648, %v892_v40  ;;  %vm898_vm15 = vweird.f32 %v892_v40  ;;  %v902_v6 = vand.u32 2147483647, %v892_v40 }
0x175a   :  { %v905_v50 = vor.u32 1.1754944e-38, %v904_v5  ;;  %vm903_vm2 = vcmp.eq.f32.partialorder %v902_v6, 8.507059e+37 }
0x175e   :  { %v1870_v41 = vpop.eup %1869 }
0x175f   :  { %v894_v42 = vmul.f32 %v1870_v41, %v892_v40  ;;  %vm899_vm1 = vweird.f32 %v1870_v41 }
0x1760   :  { %vm900_vm0 = vmor %vm898_vm15, %vm899_vm1 }
0x1761   :  { %v895_v46 = vsub.f32 1.0, %v894_v42 }
0x1763   :  { %v896_v47 = vmul.f32 %v1870_v41, %v895_v46 }
0x1765   :  { %v897_v48 = vadd.f32 %v1870_v41, %v896_v47 }
0x1767   :  { %v901_v49 = vsel %vm900_vm0, %v1870_v41, %v897_v48 }
0x1768   :  { %v906_v52 = vsel %vm903_vm2, %v905_v50, %v901_v49 }
0x1769   :  { %v909_v54 = vmul.f32 %v906_v52, %v855_v26 }
0x17c6   :  { %v912_v51 = vpop.permute.xlu1 %911 }
0x17c7   :  { %v914_v53 = vmul.f32 %v912_v51, %v906_v52 }
0x17c9   :  { %916 = vrot.lane.b32.xlu2 %v914_v53, %s1965_s11 }
0x1823   :  { %v917_v55 = vpop.permute.xlu2 %916 }
0x1824   :  { %v919_v56 = vadd.f32 %v917_v55, %v909_v54 }
0x1826   :  { %1871 = vtanh.f32 %v919_v56 }
0x182c   :  { %v1872_v57 = vpop.eup %1871 }
0x182d   :  { %922 = vrot.lane.b32.xlu0 %v1872_v57, %s1964_s30 }
0x189f   :  { %v923_v58 = vpop.permute.xlu0 %922 }
0x18a0   :  { %v925_v59 = vmul.f32 %v923_v58, %v906_v52 }
0x18a2   :  { %928 = vrot.lane.b32.xlu1 %v925_v59, %s1965_s11 }
0x1914   :  { %v929_v60 = vpop.permute.xlu1 %928 }
0x1915   :  { %1748 = vmatmul.msk.f32.vlgmr.msra.gmra.mxu3 %vm224_vm6, %v929_v60 }
0x1916   :  { %1328 = vmatpush.msra.mxu3 %v2266_v32 }
0x1918   :  { %1329 = vmatpush.msra.mxu3 %v2272_v33 }
0x191a   :  { %1330 = vmatpush.msra.mxu3 %v2287_v61 }
0x191c   :  { %1331 = vmatpush.msra.mxu3 %v2293_v62 }
0x1998   :  { %v949_v63 = vpop.f32.mrf.mxu3 }
0x1999   :  { %v952_v0 = vadd.f32 %v949_v63, %v2087_v10 }
0x199b   :  { %1873 = vtanh.f32 %v952_v0  ;;  %v1749_v4 = vmul.f32 -1.442695, %v952_v0 }
0x199d   :  { %1875 = vpow2.f32 %v1749_v4 }
0x19a1   :  { %v1874_v1 = vpop.eup %1873 }
0x19a2   :  { %975 = vrot.lane.b32.xlu2 %v1874_v1, %s1964_s30 }
0x19a3   :  { %v1876_v7 = vpop.eup %1875 }
0x19a4   :  { %v956_v8 = vadd.f32 1.0, %v1876_v7 }
0x19a6   :  { %1877 = vrcp.f32 %v956_v8  ;;  %v968_v15 = vand.u32 2147483648, %v956_v8  ;;  %vm962_vm4 = vweird.f32 %v956_v8  ;;  %v966_v16 = vand.u32 2147483647, %v956_v8 }
0x19a8   :  { %v969_v17 = vor.u32 1.1754944e-38, %v968_v15  ;;  %vm967_vm7 = vcmp.eq.f32.partialorder %v966_v16, 8.507059e+37 }
0x19ac   :  { %v1878_v2 = vpop.eup %1877 }
0x19ad   :  { %v958_v9 = vmul.f32 %v1878_v2, %v956_v8  ;;  %vm963_vm3 = vweird.f32 %v1878_v2 }
0x19ae   :  { %vm964_vm5 = vmor %vm962_vm4, %vm963_vm3 }
0x19af   :  { %v959_v3 = vsub.f32 1.0, %v958_v9 }
0x19b1   :  { %v960_v13 = vmul.f32 %v1878_v2, %v959_v3 }
0x19b3   :  { %v961_v14 = vadd.f32 %v1878_v2, %v960_v13 }
0x19b5   :  { %v965_v10 = vsel %vm964_vm5, %v1878_v2, %v961_v14 }
0x19b6   :  { %v970_v22 = vsel %vm967_vm7, %v969_v17, %v965_v10 }
0x19b7   :  { %v973_v24 = vmul.f32 %v970_v22, %v919_v56 }
0x19fc   :  { %v976_v18 = vpop.permute.xlu2 %975 }
0x19fd   :  { %v978_v23 = vmul.f32 %v976_v18, %v970_v22 }
0x19ff   :  { %980 = vrot.lane.b32.xlu0 %v978_v23, %s1965_s11 }
0x1a71   :  { %v981_v25 = vpop.permute.xlu0 %980 }
0x1a72   :  { %v983_v26 = vadd.f32 %v981_v25, %v973_v24 }
0x1a74   :  { %1879 = vtanh.f32 %v983_v26 }
0x1a7a   :  { %v1880_v27 = vpop.eup %1879 }
0x1a7b   :  { %986 = vrot.lane.b32.xlu1 %v1880_v27, %s1964_s30 }
0x1aed   :  { %v987_v28 = vpop.permute.xlu1 %986 }
0x1aee   :  { %v989_v29 = vmul.f32 %v987_v28, %v970_v22 }
0x1af0   :  { %992 = vrot.lane.b32.xlu2 %v989_v29, %s1965_s11 }
0x1b4a   :  { %v993_v30 = vpop.permute.xlu2 %992 }
0x1b4b   :  { %1750 = vmatmul.msk.f32.vlgmr.msrb.gmra.mxu1 %vm224_vm6, %v993_v30 }
0x1b4c   :  { %1392 = vmatpush.msrb.mxu1 %v2266_v32 }
0x1b4e   :  { %1393 = vmatpush.msrb.mxu1 %v2272_v33 }
0x1b50   :  { %1394 = vmatpush.msrb.mxu1 %v2287_v61 }
0x1b52   :  { %1395 = vmatpush.msrb.mxu1 %v2293_v62 }
0x1bc8   :  { %v1013_v31 = vpop.f32.mrf.mxu1 }
0x1bc9   :  { %v1016_v34 = vadd.f32 %v1013_v31, %v2089_v11 }
0x1bcb   :  { %1881 = vtanh.f32 %v1016_v34  ;;  %v1751_v36 = vmul.f32 -1.442695, %v1016_v34 }
0x1bcd   :  { %1883 = vpow2.f32 %v1751_v36 }
0x1bd1   :  { %v1882_v35 = vpop.eup %1881 }
0x1bd2   :  { %1039 = vrot.lane.b32.xlu0 %v1882_v35, %s1964_s30 }
0x1bd3   :  { %v1884_v37 = vpop.eup %1883 }
0x1bd4   :  { %v1020_v38 = vadd.f32 1.0, %v1884_v37 }
0x1bd6   :  { %1885 = vrcp.f32 %v1020_v38  ;;  %v1032_v47 = vand.u32 2147483648, %v1020_v38  ;;  %vm1026_vm9 = vweird.f32 %v1020_v38  ;;  %v1030_v48 = vand.u32 2147483647, %v1020_v38 }
0x1bd8   :  { %v1033_v5 = vor.u32 1.1754944e-38, %v1032_v47  ;;  %vm1031_vm11 = vcmp.eq.f32.partialorder %v1030_v48, 8.507059e+37 }
0x1bdc   :  { %v1886_v39 = vpop.eup %1885 }
0x1bdd   :  { %v1022_v40 = vmul.f32 %v1886_v39, %v1020_v38  ;;  %vm1027_vm8 = vweird.f32 %v1886_v39 }
0x1bde   :  { %vm1028_vm10 = vmor %vm1026_vm9, %vm1027_vm8 }
0x1bdf   :  { %v1023_v41 = vsub.f32 1.0, %v1022_v40 }
0x1be1   :  { %v1024_v42 = vmul.f32 %v1886_v39, %v1023_v41 }
0x1be3   :  { %v1025_v46 = vadd.f32 %v1886_v39, %v1024_v42 }
0x1be5   :  { %v1029_v11 = vsel %vm1028_vm10, %v1886_v39, %v1025_v46 }
0x1be6   :  { %v1034_v49 = vsel %vm1031_vm11, %v1033_v5, %v1029_v11 }
0x1be7   :  { %v1037_v51 = vmul.f32 %v1034_v49, %v983_v26 }
0x1c44   :  { %v1040_v6 = vpop.permute.xlu0 %1039 }
0x1c45   :  { %v1042_v50 = vmul.f32 %v1040_v6, %v1034_v49 }
0x1c47   :  { %1044 = vrot.lane.b32.xlu1 %v1042_v50, %s1965_s11 }
0x1cb9   :  { %v1045_v52 = vpop.permute.xlu1 %1044 }
0x1cba   :  { %v1047_v53 = vadd.f32 %v1045_v52, %v1037_v51 }
0x1cbc   :  { %1887 = vtanh.f32 %v1047_v53 }
0x1cc2   :  { %v1888_v54 = vpop.eup %1887 }
0x1cc3   :  { %1050 = vrot.lane.b32.xlu2 %v1888_v54, %s1964_s30 }
0x1d1d   :  { %v1051_v55 = vpop.permute.xlu2 %1050 }
0x1d1e   :  { %v1053_v56 = vmul.f32 %v1051_v55, %v1034_v49 }
0x1d20   :  { %1056 = vrot.lane.b32.xlu0 %v1053_v56, %s1965_s11 }
0x1d92   :  { %v1057_v57 = vpop.permute.xlu0 %1056 }
0x1d93   :  { %1752 = vmatmul.msk.f32.vlgmr.msrb.gmra.mxu2 %vm224_vm6, %v1057_v57 }
0x1d94   :  { %1456 = vmatpush.msrb.mxu2 %v2266_v32 }
0x1d96   :  { %1457 = vmatpush.msrb.mxu2 %v2272_v33 }
0x1d98   :  { %1458 = vmatpush.msrb.mxu2 %v2287_v61 }
0x1d9a   :  { %1459 = vmatpush.msrb.mxu2 %v2293_v62 }
0x1e16   :  { %v1077_v58 = vpop.f32.mrf.mxu2 }
0x1e17   :  { %v1080_v59 = vadd.f32 %v1077_v58, %v2091_v12 }
0x1e19   :  { %1889 = vtanh.f32 %v1080_v59  ;;  %v1753_v63 = vmul.f32 -1.442695, %v1080_v59 }
0x1e1b   :  { %1891 = vpow2.f32 %v1753_v63 }
0x1e1f   :  { %v1890_v60 = vpop.eup %1889 }
0x1e20   :  { %1103 = vrot.lane.b32.xlu1 %v1890_v60, %s1964_s30 }
0x1e21   :  { %v1892_v0 = vpop.eup %1891 }
0x1e22   :  { %v1084_v1 = vadd.f32 1.0, %v1892_v0 }
0x1e24   :  { %1893 = vrcp.f32 %v1084_v1  ;;  %v1096_v61 = vand.u32 2147483648, %v1084_v1  ;;  %vm1090_vm13 = vweird.f32 %v1084_v1  ;;  %v1094_v62 = vand.u32 2147483647, %v1084_v1 }
0x1e26   :  { %v1097_v2 = vor.u32 1.1754944e-38, %v1096_v61  ;;  %vm1095_vm1 = vcmp.eq.f32.partialorder %v1094_v62, 8.507059e+37 }
0x1e2a   :  { %v1894_v4 = vpop.eup %1893 }
0x1e2b   :  { %v1086_v32 = vmul.f32 %v1894_v4, %v1084_v1  ;;  %vm1091_vm12 = vweird.f32 %v1894_v4 }
0x1e2c   :  { %vm1092_vm14 = vmor %vm1090_vm13, %vm1091_vm12 }
0x1e2d   :  { %v1087_v7 = vsub.f32 1.0, %v1086_v32 }
0x1e2f   :  { %v1088_v33 = vmul.f32 %v1894_v4, %v1087_v7 }
0x1e31   :  { %v1089_v8 = vadd.f32 %v1894_v4, %v1088_v33 }
0x1e33   :  { %v1093_v12 = vsel %vm1092_vm14, %v1894_v4, %v1089_v8 }
0x1e34   :  { %v1098_v3 = vsel %vm1095_vm1, %v1097_v2, %v1093_v12 }
0x1e35   :  { %v1101_v14 = vmul.f32 %v1098_v3, %v1047_v53 }
0x1e92   :  { %v1104_v9 = vpop.permute.xlu1 %1103 }
0x1e93   :  { %v1106_v13 = vmul.f32 %v1104_v9, %v1098_v3 }
0x1e95   :  { %1108 = vrot.lane.b32.xlu2 %v1106_v13, %s1965_s11 }
0x1eef   :  { %v1109_v15 = vpop.permute.xlu2 %1108 }
0x1ef0   :  { %v1111_v16 = vadd.f32 %v1109_v15, %v1101_v14 }
0x1ef2   :  { %1895 = vtanh.f32 %v1111_v16 }
0x1ef8   :  { %v1896_v10 = vpop.eup %1895 }
0x1ef9   :  { %1114 = vrot.lane.b32.xlu0 %v1896_v10, %s1964_s30 }
0x1f6b   :  { %v1115_v17 = vpop.permute.xlu0 %1114 }
0x1f6c   :  { %v1117_v18 = vmul.f32 %v1115_v17, %v1098_v3 }
0x1f6e   :  { %1120 = vrot.lane.b32.xlu1 %v1117_v18, %s1965_s11 }
0x1fe0   :  { %v1121_v22 = vpop.permute.xlu1 %1120 }
0x1fe1   :  { %1754 = vmatmul.msk.f32.vlgmr.msrb.gmra.mxu3 %vm224_vm6, %v1121_v22 }
0x2064   :  { %v1141_v23 = vpop.f32.mrf.mxu3 }
0x2065   :  { %v1144_v24 = vadd.f32 %v1141_v23, %v2122_v43 }
0x2067   :  { %1897 = vtanh.f32 %v1144_v24  ;;  %v1755_v26 = vmul.f32 -1.442695, %v1144_v24 }
0x2069   :  { %1899 = vpow2.f32 %v1755_v26 }
0x206d   :  { %v1898_v25 = vpop.eup %1897 }
0x206e   :  { %1167 = vrot.lane.b32.xlu2 %v1898_v25, %s1964_s30 }
0x206f   :  { %v1900_v27 = vpop.eup %1899 }
0x2070   :  { %v1148_v28 = vadd.f32 1.0, %v1900_v27 }
0x2072   :  { %1901 = vrcp.f32 %v1148_v28  ;;  %v1160_v36 = vand.u32 2147483648, %v1148_v28  ;;  %vm1154_vm0 = vweird.f32 %v1148_v28  ;;  %v1158_v37 = vand.u32 2147483647, %v1148_v28 }
0x2074   :  { %v1161_v38 = vor.u32 1.1754944e-38, %v1160_v36  ;;  %vm1159_vm3 = vcmp.eq.f32.partialorder %v1158_v37, 8.507059e+37 }
0x2078   :  { %v1902_v29 = vpop.eup %1901 }
0x2079   :  { %v1150_v30 = vmul.f32 %v1902_v29, %v1148_v28  ;;  %vm1155_vm15 = vweird.f32 %v1902_v29 }
0x207a   :  { %vm1156_vm2 = vmor %vm1154_vm0, %vm1155_vm15 }
0x207b   :  { %v1151_v31 = vsub.f32 1.0, %v1150_v30 }
0x207d   :  { %v1152_v34 = vmul.f32 %v1902_v29, %v1151_v31 }
0x207f   :  { %v1153_v35 = vadd.f32 %v1902_v29, %v1152_v34 }
0x2081   :  { %v1157_v43 = vsel %vm1156_vm2, %v1902_v29, %v1153_v35 }
0x2082   :  { %v1162_v40 = vsel %vm1159_vm3, %v1161_v38, %v1157_v43 }
0x2083   :  { %v1165_v42 = vmul.f32 %v1162_v40, %v1111_v16 }
0x20c8   :  { %v1168_v39 = vpop.permute.xlu2 %1167 }
0x20c9   :  { %v1170_v41 = vmul.f32 %v1168_v39, %v1162_v40 }
0x20cb   :  { %1172 = vrot.lane.b32.xlu0 %v1170_v41, %s1965_s11 }
0x213d   :  { %v1173_v46 = vpop.permute.xlu0 %1172 }
0x213e   :  { %v1175_v47 = vadd.f32 %v1173_v46, %v1165_v42 }
0x2140   :  { %1903 = vtanh.f32 %v1175_v47 }
0x2146   :  { %v1904_v48 = vpop.eup %1903 }
0x2147   :  { %1178 = vrot.lane.b32.xlu1 %v1904_v48, %s1964_s30 }
0x21b9   :  { %v1179_v11 = vpop.permute.xlu1 %1178 }
0x21ba   :  { %v1181_v5 = vmul.f32 %v1179_v11, %v1162_v40 }
0x21bc   :  { %1184 = vrot.lane.b32.xlu2 %v1181_v5, %s1965_s11 }
0x2216   :  { %v1185_v6 = vpop.permute.xlu2 %1184 }
0x2217   :  { %1756 = vmatmul.msk.f32.vlgmr.msra.gmra.mxu1 %vm224_vm6, %v1185_v6 }
0x2294   :  { %v1205_v49 = vpop.f32.mrf.mxu1 }
0x2295   :  { %v1208_v50 = vadd.f32 %v1205_v49, %v2124_v44 }
0x2297   :  { %1905 = vtanh.f32 %v1208_v50  ;;  %v1757_v52 = vmul.f32 -1.442695, %v1208_v50 }
0x2299   :  { %1907 = vpow2.f32 %v1757_v52 }
0x229d   :  { %v1906_v51 = vpop.eup %1905 }
0x229e   :  { %1231 = vrot.lane.b32.xlu0 %v1906_v51, %s1964_s30 }
0x229f   :  { %v1908_v53 = vpop.eup %1907 }
0x22a0   :  { %v1212_v54 = vadd.f32 1.0, %v1908_v53 }
0x22a2   :  { %1909 = vrcp.f32 %v1212_v54  ;;  %v1224_v60 = vand.u32 2147483648, %v1212_v54  ;;  %vm1218_vm5 = vweird.f32 %v1212_v54  ;;  %v1222_v63 = vand.u32 2147483647, %v1212_v54 }
0x22a4   :  { %v1225_v0 = vor.u32 1.1754944e-38, %v1224_v60  ;;  %vm1223_vm8 = vcmp.eq.f32.partialorder %v1222_v63, 8.507059e+37 }
0x22a8   :  { %v1910_v55 = vpop.eup %1909 }
0x22a9   :  { %v1214_v56 = vmul.f32 %v1910_v55, %v1212_v54  ;;  %vm1219_vm4 = vweird.f32 %v1910_v55 }
0x22aa   :  { %vm1220_vm7 = vmor %vm1218_vm5, %vm1219_vm4 }
0x22ab   :  { %v1215_v57 = vsub.f32 1.0, %v1214_v56 }
0x22ad   :  { %v1216_v58 = vmul.f32 %v1910_v55, %v1215_v57 }
0x22af   :  { %v1217_v59 = vadd.f32 %v1910_v55, %v1216_v58 }
0x22b1   :  { %v1221_v44 = vsel %vm1220_vm7, %v1910_v55, %v1217_v59 }
0x22b2   :  { %v1226_v4 = vsel %vm1223_vm8, %v1225_v0, %v1221_v44 }
0x22b3   :  { %v1229_v7 = vmul.f32 %v1226_v4, %v1175_v47 }
0x2310   :  { %v1232_v1 = vpop.permute.xlu0 %1231 }
0x2311   :  { %v1234_v32 = vmul.f32 %v1232_v1, %v1226_v4 }
0x2313   :  { %1236 = vrot.lane.b32.xlu1 %v1234_v32, %s1965_s11 }
0x2385   :  { %v1237_v33 = vpop.permute.xlu1 %1236 }
0x2386   :  { %v1239_v8 = vadd.f32 %v1237_v33, %v1229_v7 }
0x2388   :  { %1911 = vtanh.f32 %v1239_v8 }
0x238e   :  { %v1912_v61 = vpop.eup %1911 }
0x238f   :  { %1242 = vrot.lane.b32.xlu2 %v1912_v61, %s1964_s30 }
0x23e9   :  { %v1243_v62 = vpop.permute.xlu2 %1242 }
0x23ea   :  { %v1245_v12 = vmul.f32 %v1243_v62, %v1226_v4 }
0x23ec   :  { %1248 = vrot.lane.b32.xlu0 %v1245_v12, %s1965_s11 }
0x245e   :  { %v1249_v2 = vpop.permute.xlu0 %1248 }
0x245f   :  { %1758 = vmatmul.msk.f32.vlgmr.msra.gmra.mxu2 %vm224_vm6, %v1249_v2 }
0x24e2   :  { %v1269_v9 = vpop.f32.mrf.mxu2 }
0x24e3   :  { %v1272_v3 = vadd.f32 %v1269_v9, %v2126_v45 }
0x24e5   :  { %1913 = vtanh.f32 %v1272_v3  ;;  %v1759_v14 = vmul.f32 -1.442695, %v1272_v3 }
0x24e7   :  { %1915 = vpow2.f32 %v1759_v14 }
0x24eb   :  { %v1914_v13 = vpop.eup %1913 }
0x24ec   :  { %1295 = vrot.lane.b32.xlu1 %v1914_v13, %s1964_s30 }
0x24ed   :  { %v1916_v15 = vpop.eup %1915 }
0x24ee   :  { %v1276_v16 = vadd.f32 1.0, %v1916_v15 }
0x24f0   :  { %1917 = vrcp.f32 %v1276_v16  ;;  %v1288_v24 = vand.u32 2147483648, %v1276_v16  ;;  %vm1282_vm10 = vweird.f32 %v1276_v16  ;;  %v1286_v25 = vand.u32 2147483647, %v1276_v16 }
0x24f2   :  { %v1289_v26 = vor.u32 1.1754944e-38, %v1288_v24  ;;  %vm1287_vm12 = vcmp.eq.f32.partialorder %v1286_v25, 8.507059e+37 }
0x24f6   :  { %v1918_v10 = vpop.eup %1917 }
0x24f7   :  { %v1278_v17 = vmul.f32 %v1918_v10, %v1276_v16  ;;  %vm1283_vm9 = vweird.f32 %v1918_v10 }
0x24f8   :  { %vm1284_vm11 = vmor %vm1282_vm10, %vm1283_vm9  ;;  %vm1537_vm10 = vcmask 162816  }
0x24f9   :  { %v1279_v18 = vsub.f32 1.0, %v1278_v17 }
0x24fb   :  { %v1280_v22 = vmul.f32 %v1918_v10, %v1279_v18 }
0x24fd   :  { %v1281_v23 = vadd.f32 %v1918_v10, %v1280_v22 }
0x24ff   :  { %v1285_v45 = vsel %vm1284_vm11, %v1918_v10, %v1281_v23 }
0x2500   :  { %v1290_v28 = vsel %vm1287_vm12, %v1289_v26, %v1285_v45 }
0x2501   :  { %v1293_v30 = vmul.f32 %v1290_v28, %v1239_v8 }
0x255e   :  { %v1296_v27 = vpop.permute.xlu1 %1295 }
0x255f   :  { %v1298_v29 = vmul.f32 %v1296_v27, %v1290_v28 }
0x2561   :  { %1300 = vrot.lane.b32.xlu2 %v1298_v29, %s1965_s11 }
0x25bb   :  { %v1301_v31 = vpop.permute.xlu2 %1300 }
0x25bc   :  { %v1303_v34 = vadd.f32 %v1301_v31, %v1293_v30 }
0x25be   :  { %1919 = vtanh.f32 %v1303_v34 }
0x25c4   :  { %v1920_v35 = vpop.eup %1919 }
0x25c5   :  { %1306 = vrot.lane.b32.xlu0 %v1920_v35, %s1964_s30 }
0x2637   :  { %v1307_v36 = vpop.permute.xlu0 %1306 }
0x2638   :  { %v1309_v37 = vmul.f32 %v1307_v36, %v1290_v28 }
0x263a   :  { %1312 = vrot.lane.b32.xlu1 %v1309_v37, %s1965_s11 }
0x26ac   :  { %v1313_v43 = vpop.permute.xlu1 %1312 }
0x26ad   :  { %1760 = vmatmul.msk.f32.vlgmr.msra.gmra.mxu3 %vm224_vm6, %v1313_v43 }
0x2730   :  { %v1333_v38 = vpop.f32.mrf.mxu3 }
0x2731   :  { %v1336_v39 = vadd.f32 %v1333_v38, %v2157_v19 }
0x2733   :  { %1921 = vtanh.f32 %v1336_v39  ;;  %v1761_v41 = vmul.f32 -1.442695, %v1336_v39 }
0x2735   :  { %1923 = vpow2.f32 %v1761_v41 }
0x2739   :  { %v1922_v40 = vpop.eup %1921 }
0x273a   :  { %1359 = vrot.lane.b32.xlu2 %v1922_v40, %s1964_s30 }
0x273b   :  { %v1924_v42 = vpop.eup %1923 }
0x273c   :  { %v1340_v46 = vadd.f32 1.0, %v1924_v42 }
0x273e   :  { %1925 = vrcp.f32 %v1340_v46  ;;  %v1352_v49 = vand.u32 2147483648, %v1340_v46  ;;  %vm1346_vm14 = vweird.f32 %v1340_v46  ;;  %v1350_v50 = vand.u32 2147483647, %v1340_v46 }
0x2740   :  { %v1353_v51 = vor.u32 1.1754944e-38, %v1352_v49  ;;  %vm1351_vm15 = vcmp.eq.f32.partialorder %v1350_v50, 8.507059e+37  ;;  %v1502_v49 = vld [vmem:[%s2406_s3] sm:$0xff] }
0x2744   :  { %v1926_v47 = vpop.eup %1925 }
0x2745   :  { %v1342_v48 = vmul.f32 %v1926_v47, %v1340_v46  ;;  %vm1347_vm13 = vweird.f32 %v1926_v47 }
0x2746   :  { %vm1348_vm1 = vmor %vm1346_vm14, %vm1347_vm13 }
0x2747   :  { %v1343_v11 = vsub.f32 1.0, %v1342_v48 }
0x2749   :  { %v1344_v5 = vmul.f32 %v1926_v47, %v1343_v11  ;;  %v1505_v11 = vld [vmem:[%s2406_s3 + $0x18] sm:$0xff] }
0x274a   :  { %1527 = vmatpush.msrb.mxu3 %v1505_v11 }
0x274b   :  { %v1345_v6 = vadd.f32 %v1926_v47, %v1344_v5  ;;  %v1504_v5 = vld [vmem:[%s2406_s3 + $0x10] sm:$0xff] }
0x274c   :  { %1528 = vmatpush.msrb.mxu3 %v1504_v5 }
0x274d   :  { %v1349_v19 = vsel %vm1348_vm1, %v1926_v47, %v1345_v6  ;;  %v1503_v6 = vld [vmem:[%s2406_s3 + $0x8] sm:$0xff]  ;;  %s1966_s3 = smov 108  }
0x274e   :  { %v1354_v53 = vsel %vm1351_vm15, %v1353_v51, %v1349_v19  ;;  %1529 = vmatpush.msrb.mxu3 %v1503_v6 }
0x274f   :  { %v1357_v55 = vmul.f32 %v1354_v53, %v1303_v34 }
0x2750   :  { %1530 = vmatpush.msrb.mxu3 %v1502_v49 }
0x2794   :  { %v1360_v52 = vpop.permute.xlu2 %1359 }
0x2795   :  { %v1362_v54 = vmul.f32 %v1360_v52, %v1354_v53  ;;  %v1784_v52 = vld [vmem:[%s2407_s4] ss:$0 sm:$0xff] }
0x2797   :  { %1364 = vrot.lane.b32.xlu0 %v1362_v54, %s1965_s11  ;;  %v1535_v54 = vld [vmem:[%s2408_s6] sm:$0xff] }
0x2809   :  { %v1365_v56 = vpop.permute.xlu0 %1364 }
0x280a   :  { %v1367_v57 = vadd.f32 %v1365_v56, %v1357_v55 }
0x280c   :  { %1927 = vtanh.f32 %v1367_v57 }
0x2812   :  { %v1928_v58 = vpop.eup %1927 }
0x2813   :  { %1370 = vrot.lane.b32.xlu1 %v1928_v58, %s1964_s30  ;;  %v1546_v58 = vld [vmem:[%s2409_s7 + $0x10] sm:$0xf] }
0x2885   :  { %v1371_v59 = vpop.permute.xlu1 %1370 }
0x2886   :  { %v1373_v60 = vmul.f32 %v1371_v59, %v1354_v53  ;;  %v1545_v59 = vld [vmem:[%s2409_s7 + $0x8] sm:$0xff] }
0x2888   :  { %1376 = vrot.lane.b32.xlu2 %v1373_v60, %s1965_s11  ;;  %v1544_v60 = vld [vmem:[%s2409_s7] sm:$0xff] }
0x28e2   :  { %v1377_v63 = vpop.permute.xlu2 %1376 }
0x28e3   :  { %1762 = vmatmul.msk.f32.vlgmr.msrb.gmra.mxu1 %vm224_vm6, %v1377_v63 }
0x2960   :  { %v1397_v44 = vpop.f32.mrf.mxu1 }
0x2961   :  { %v1400_v0 = vadd.f32 %v1397_v44, %v2159_v20 }
0x2963   :  { %1929 = vtanh.f32 %v1400_v0  ;;  %v1763_v4 = vmul.f32 -1.442695, %v1400_v0 }
0x2965   :  { %1931 = vpow2.f32 %v1763_v4 }
0x2969   :  { %v1930_v1 = vpop.eup %1929 }
0x296a   :  { %1423 = vrot.lane.b32.xlu0 %v1930_v1, %s1964_s30  ;;  %v1574_v1 = vld [vmem:[%s2410_s5] sm:$0xff]  ;;  %s1967_s5 = smov 24  }
0x296b   :  { %v1932_v32 = vpop.eup %1931 }
0x296c   :  { %v1404_v7 = vadd.f32 1.0, %v1932_v32 }
0x296e   :  { %1933 = vrcp.f32 %v1404_v7  ;;  %v1416_v2 = vand.u32 2147483648, %v1404_v7  ;;  %vm1410_vm2 = vweird.f32 %v1404_v7  ;;  %v1414_v9 = vand.u32 2147483647, %v1404_v7 }
0x2970   :  { %v1417_v3 = vor.u32 1.1754944e-38, %v1416_v2  ;;  %vm1415_vm4 = vcmp.eq.f32.partialorder %v1414_v9, 8.507059e+37 }
0x2974   :  { %v1934_v33 = vpop.eup %1933 }
0x2975   :  { %v1406_v8 = vmul.f32 %v1934_v33, %v1404_v7  ;;  %vm1411_vm0 = vweird.f32 %v1934_v33 }
0x2976   :  { %vm1412_vm3 = vmor %vm1410_vm2, %vm1411_vm0 }
0x2977   :  { %v1407_v61 = vsub.f32 1.0, %v1406_v8 }
0x2979   :  { %v1408_v62 = vmul.f32 %v1934_v33, %v1407_v61 }
0x297b   :  { %v1409_v12 = vadd.f32 %v1934_v33, %v1408_v62 }
0x297d   :  { %v1413_v20 = vsel %vm1412_vm3, %v1934_v33, %v1409_v12 }
0x297e   :  { %v1418_v14 = vsel %vm1415_vm4, %v1417_v3, %v1413_v20 }
0x297f   :  { %v1421_v16 = vmul.f32 %v1418_v14, %v1367_v57 }
0x29dc   :  { %v1424_v13 = vpop.permute.xlu0 %1423 }
0x29dd   :  { %v1426_v15 = vmul.f32 %v1424_v13, %v1418_v14 }
0x29df   :  { %1428 = vrot.lane.b32.xlu1 %v1426_v15, %s1965_s11 }
0x2a51   :  { %v1429_v10 = vpop.permute.xlu1 %1428 }
0x2a52   :  { %v1431_v17 = vadd.f32 %v1429_v10, %v1421_v16 }
0x2a54   :  { %1935 = vtanh.f32 %v1431_v17 }
0x2a5a   :  { %v1936_v18 = vpop.eup %1935 }
0x2a5b   :  { %1434 = vrot.lane.b32.xlu2 %v1936_v18, %s1964_s30 }
0x2ab5   :  { %v1435_v22 = vpop.permute.xlu2 %1434 }
0x2ab6   :  { %v1437_v23 = vmul.f32 %v1435_v22, %v1418_v14 }
0x2ab8   :  { %1440 = vrot.lane.b32.xlu0 %v1437_v23, %s1965_s11 }
0x2b2a   :  { %v1441_v24 = vpop.permute.xlu0 %1440 }
0x2b2b   :  { %1764 = vmatmul.msk.f32.vlgmr.msrb.gmra.mxu2 %vm224_vm6, %v1441_v24 }
0x2bae   :  { %v1461_v25 = vpop.f32.mrf.mxu2 }
0x2baf   :  { %v1464_v45 = vadd.f32 %v1461_v25, %v2161_v21 }
0x2bb1   :  { %1937 = vtanh.f32 %v1464_v45  ;;  %v1765_v27 = vmul.f32 -1.442695, %v1464_v45 }
0x2bb3   :  { %1939 = vpow2.f32 %v1765_v27 }
0x2bb7   :  { %v1938_v26 = vpop.eup %1937 }
0x2bb8   :  { %1487 = vrot.lane.b32.xlu1 %v1938_v26, %s1964_s30 }
0x2bb9   :  { %v1940_v28 = vpop.eup %1939 }
0x2bba   :  { %v1468_v29 = vadd.f32 1.0, %v1940_v28 }
0x2bbc   :  { %1941 = vrcp.f32 %v1468_v29  ;;  %v1480_v37 = vand.u32 2147483648, %v1468_v29  ;;  %vm1474_vm7 = vweird.f32 %v1468_v29  ;;  %v1478_v43 = vand.u32 2147483647, %v1468_v29 }
0x2bbe   :  { %v1481_v38 = vor.u32 1.1754944e-38, %v1480_v37  ;;  %vm1479_vm9 = vcmp.eq.f32.partialorder %v1478_v43, 8.507059e+37 }
0x2bc2   :  { %v1942_v30 = vpop.eup %1941 }
0x2bc3   :  { %v1470_v31 = vmul.f32 %v1942_v30, %v1468_v29  ;;  %vm1475_vm5 = vweird.f32 %v1942_v30 }
0x2bc4   :  { %vm1476_vm8 = vmor %vm1474_vm7, %vm1475_vm5 }
0x2bc5   :  { %v1471_v34 = vsub.f32 1.0, %v1470_v31 }
0x2bc7   :  { %v1472_v35 = vmul.f32 %v1942_v30, %v1471_v34 }
0x2bc9   :  { %v1473_v36 = vadd.f32 %v1942_v30, %v1472_v35 }
0x2bcb   :  { %v1477_v21 = vsel %vm1476_vm8, %v1942_v30, %v1473_v36  ;;  %vm1672_vm8 = vcmask 31744  }
0x2bcc   :  { %v1482_v40 = vsel %vm1479_vm9, %v1481_v38, %v1477_v21  ;;  %vm1700_vm9 = vcmask 7168  }
0x2bcd   :  { %v1485_v42 = vmul.f32 %v1482_v40, %v1431_v17  ;;  %v1669_v17 = vld [vmem:[%s2411_s8] sm:$0xf]  ;;  %s1968_s8 = smov 104  }
0x2c2a   :  { %v1488_v39 = vpop.permute.xlu1 %1487 }
0x2c2b   :  { %v1490_v41 = vmul.f32 %v1488_v39, %v1482_v40 }
0x2c2d   :  { %1492 = vrot.lane.b32.xlu2 %v1490_v41, %s1965_s11 }
0x2c87   :  { %v1493_v46 = vpop.permute.xlu2 %1492 }
0x2c88   :  { %v1495_v47 = vadd.f32 %v1493_v46, %v1485_v42 }
0x2c8a   :  { %1943 = vtanh.f32 %v1495_v47 }
0x2c90   :  { %v1944_v48 = vpop.eup %1943 }
0x2c91   :  { %1498 = vrot.lane.b32.xlu0 %v1944_v48, %s1964_s30 }
0x2d03   :  { %v1499_v50 = vpop.permute.xlu0 %1498 }
0x2d04   :  { %v1501_v19 = vmul.f32 %v1499_v50, %v1482_v40 }
0x2d06   :  { %1511 = vrot.lane.b32.xlu1 %v1501_v19, %s1965_s11 }
0x2d78   :  { %v1512_v51 = vpop.permute.xlu1 %1511 }
0x2d79   :  { %1766 = vmatmul.msk.f32.vlgmr.msrb.gmra.mxu3 %vm224_vm6, %v1512_v51  ;;  %vm1550_vm6 = vcmask 1043456   ;;  %v1671_v51 = vstv %s2412_s9 }
0x2d7a   :  { %1767 = vmatpush.msk.msra.mxu1 %vm1550_vm6, %v1546_v58  ;;  %1769 = vmatpush.msk.msra.mxu2 %vm1550_vm6, %v1546_v58 }
0x2d7b   :  { %1773 = vmatpush.msk.msra.mxu3 %vm1550_vm6, %v1669_v17 }
0x2d7c   :  { %1568 = vmatpush.msra.mxu1 %v1545_v59  ;;  %1593 = vmatpush.msra.mxu2 %v1545_v59 }
0x2d7e   :  { %1569 = vmatpush.msra.mxu1 %v1544_v60  ;;  %1594 = vmatpush.msra.mxu2 %v1544_v60 }
0x2dfc   :  { %v1532_v53 = vpop.f32.mrf.mxu3 }
0x2dfd   :  { %v1533_v55 = vadd.f32 %v1784_v52, %v1532_v53 }
0x2dff   :  { %1615 = vrot.lane.b32.xlu1 %v1533_v55, %s1966_s3  ;;  %v1536_v56 = vadd.f32 %v1535_v54, %v1533_v55 }
0x2e01   :  { %v1538_v57 = vsel %vm1537_vm10, %v1536_v56, -inf }
0x2e02   :  { %1539 = vmax.xlane.f32.xlu2 %v1538_v57 }
0x2e71   :  { %v1616_v36 = vpop.permute.xlu1 %1615 }
0x2e75   :  { %v1540_v63 = vpop.xlane.xlu2 %1539 }
0x2e76   :  { %v1541_v44 = vsub.f32 %v1536_v56, %v1540_v63 }
0x2e78   :  { %v1542_v0 = vmul.f32 1.442695, %v1541_v44 }
0x2e7a   :  { %1945 = vpow2.f32 %v1542_v0 }
0x2e80   :  { %v1946_v4 = vpop.eup %1945 }
0x2e81   :  { %v1575_v32 = vmul.f32 %v1946_v4, %v1574_v1  ;;  %1768 = vmatmul.msk.f32.vlgmr.msra.gmra.mxu1 %vm1537_vm10, %v1946_v4 }
0x2e83   :  { %1770 = vmatmul.msk.f32.vlgmr.msra.gmra.mxu2 %vm1537_vm10, %v1575_v32 }
0x2efe   :  { %v1571_v7 = vpop.f32.mrf.mxu1 }
0x2eff   :  { %1947 = vrcp.f32 %v1571_v7  ;;  %v1610_v62 = vand.u32 2147483648, %v1571_v7  ;;  %v1608_v2 = vand.u32 2147483647, %v1571_v7  ;;  %vm1604_vm12 = vweird.f32 %v1571_v7 }
0x2f01   :  { %v1611_v20 = vor.u32 1.1754944e-38, %v1610_v62  ;;  %vm1609_vm14 = vcmp.eq.f32.partialorder %v1608_v2, 8.507059e+37 }
0x2f05   :  { %v1948_v33 = vpop.eup %1947 }
0x2f06   :  { %v1600_v8 = vmul.f32 %v1948_v33, %v1571_v7  ;;  %vm1605_vm11 = vweird.f32 %v1948_v33  ;;  %v1596_v13 = vpop.f32.mrf.mxu2 }
0x2f07   :  { %vm1606_vm13 = vmor %vm1604_vm12, %vm1605_vm11 }
0x2f08   :  { %v1601_v61 = vsub.f32 1.0, %v1600_v8 }
0x2f0a   :  { %v1602_v12 = vmul.f32 %v1948_v33, %v1601_v61 }
0x2f0c   :  { %v1603_v9 = vadd.f32 %v1948_v33, %v1602_v12 }
0x2f0e   :  { %v1607_v3 = vsel %vm1606_vm13, %v1948_v33, %v1603_v9 }
0x2f0f   :  { %v1612_v14 = vsel %vm1609_vm14, %v1611_v20, %v1607_v3 }
0x2f10   :  { %v1613_v15 = vmul.f32 %v1612_v14, %v1596_v13 }
0x2f12   :  { %1640 = vrot.lane.b32.xlu0 %v1613_v15, %s1967_s5  ;;  %v1618_v37 = vsub.f32 %v1613_v15, %v1616_v36 }
0x2f14   :  { %v1771_v43 = vmul.f32 -10.0, %v1618_v37 }
0x2f16   :  { %v1621_v21 = vmul.f32 1.442695, %v1771_v43 }
0x2f84   :  { %v1641_v16 = vpop.permute.xlu0 %1640 }
0x2f85   :  { %v1643_v10 = vsub.f32 %v1533_v55, %v1641_v16 }
0x2f87   :  { %v1772_v18 = vmul.f32 -10.0, %v1643_v10 }
0x2f89   :  { %v1646_v22 = vmul.f32 1.442695, %v1772_v18 }
0x2f8b   :  { %1949 = vpow2.f32 %v1646_v22 }
0x2f91   :  { %v1950_v23 = vpop.eup %1949 }
0x2f92   :  { %v1648_v24 = vadd.f32 1.0, %v1950_v23 }
0x2f94   :  { %1951 = vrcp.f32 %v1648_v24  ;;  %v1660_v27 = vand.u32 2147483648, %v1648_v24  ;;  %v1658_v29 = vand.u32 2147483647, %v1648_v24  ;;  %vm1654_vm15 = vweird.f32 %v1648_v24 }
0x2f95   :  { %1953 = vpow2.f32 %v1621_v21 }
0x2f96   :  { %v1661_v31 = vor.u32 1.1754944e-38, %v1660_v27  ;;  %vm1659_vm2 = vcmp.eq.f32.partialorder %v1658_v29, 8.507059e+37 }
0x2f9a   :  { %v1952_v25 = vpop.eup %1951 }
0x2f9b   :  { %v1650_v45 = vmul.f32 %v1952_v25, %v1648_v24  ;;  %vm1655_vm1 = vweird.f32 %v1952_v25  ;;  %v1954_v38 = vpop.eup %1953 }
0x2f9c   :  { %vm1656_vm0 = vmor %vm1654_vm15, %vm1655_vm1  ;;  %v1623_v39 = vadd.f32 1.0, %v1954_v38 }
0x2f9d   :  { %v1651_v26 = vsub.f32 1.0, %v1650_v45 }
0x2f9e   :  { %1955 = vrcp.f32 %v1623_v39  ;;  %v1635_v48 = vand.u32 2147483648, %v1623_v39  ;;  %vm1629_vm4 = vweird.f32 %v1623_v39  ;;  %v1633_v11 = vand.u32 2147483647, %v1623_v39 }
0x2f9f   :  { %v1652_v28 = vmul.f32 %v1952_v25, %v1651_v26 }
0x2fa0   :  { %v1636_v6 = vor.u32 1.1754944e-38, %v1635_v48  ;;  %vm1634_vm7 = vcmp.eq.f32.partialorder %v1633_v11, 8.507059e+37 }
0x2fa1   :  { %v1653_v30 = vadd.f32 %v1952_v25, %v1652_v28 }
0x2fa3   :  { %v1657_v34 = vsel %vm1656_vm0, %v1952_v25, %v1653_v30 }
0x2fa4   :  { %v1662_v35 = vsel %vm1659_vm2, %v1661_v31, %v1657_v34  ;;  %v1956_v40 = vpop.eup %1955 }
0x2fa5   :  { %1665 = vrot.lane.b32.xlu0 %v1662_v35, %s1968_s8  ;;  %v1625_v41 = vmul.f32 %v1956_v40, %v1623_v39  ;;  %vm1630_vm3 = vweird.f32 %v1956_v40 }
0x2fa6   :  { %vm1631_vm5 = vmor %vm1629_vm4, %vm1630_vm3 }
0x2fa7   :  { %v1626_v42 = vsub.f32 1.0, %v1625_v41 }
0x2fa9   :  { %v1627_v46 = vmul.f32 %v1956_v40, %v1626_v42 }
0x2fab   :  { %v1628_v47 = vadd.f32 %v1956_v40, %v1627_v46 }
0x2fad   :  { %v1632_v5 = vsel %vm1631_vm5, %v1956_v40, %v1628_v47 }
0x2fae   :  { %v1637_v50 = vsel %vm1634_vm7, %v1636_v6, %v1632_v5 }
0x3017   :  { %v1666_v49 = vpop.permute.xlu0 %1665 }
0x3018   :  { %v1668_v19 = vsub.f32 %v1637_v50, %v1666_v49 }
0x301a   :  { %1774 = vmatmul.msk.f32.vlgmr.msra.gmra.mxu3 %vm1672_vm8, %v1668_v19 }
0x309d   :  { %v1696_v52 = vpop.f32.mrf.mxu3 }
0x309e   :  { %v1697_v53 = vadd.f32 %v1696_v52, %v1671_v51 }
0x30a0   :  { %1957 = vtanh.f32 %v1697_v53 }
0x30a6   :  { %v1958_v54 = vpop.eup %1957 }
0x30a7   :  { %1701 = vst.msk [vmem:[%s2413_s10] sm:$0xff] %vm1700_vm9, %v1958_v54 }

</bundles_post_ra>
